<compile_context>
chip_gen: v7x
topology: tpu7x:2x2x1
jax: 0.10.0
libtpu: 0.0.40
codegen_flags: <defaults>
</compile_context>

<pallas_src>
import jax
import jax.numpy as jnp
import numpy as np
from jax.experimental import pallas as pl
from jax.experimental.pallas import tpu as pltpu


def _bilstm_attention_kernel(
    xpair_ref,    # (S, Bp, 2D)  row (t, b) holds [x[t, b] | x[S-1-t, b]]
    mask_ref,     # (S, Bp, 1)
    wqT_ref,      # (D, D)       qlearner weight, transposed (in, out)
    bq_ref,       # (1, D)
    wih_ref,      # (2D, 8D)     fused input weights, cols [i_f i_b f_f f_b o_f o_b g_f g_b]
    ball_ref,     # (1, 8D)      fused biases (b_ih + b_hh), same column order
    whh_ref,      # (2D, 8D)     fused block-diagonal recurrent weights, bfloat16
    wclsT_ref,    # (2D, dimout) classifier weight, transposed
    bc_ref,       # (1, dimout)
    logits_ref,   # out: (Bp, dimout)
    a_ref,        # out: (S, Bp, 1)
):
    S, B, DD = xpair_ref.shape
    D = DD // 2

    xpair = xpair_ref[...]                               # (S, B, 2D)
    x = xpair[:, :, :D]                                  # forward half == original x
    mask = mask_ref[...]                                 # (S, B, 1)

    # x_avg = sum_t x / sum_t mask ;  q = qlearner(x_avg)
    x_avg = jnp.sum(x, axis=0) / jnp.sum(mask, axis=0)   # (B, D)
    q = (jnp.dot(x_avg, wqT_ref[...], preferred_element_type=jnp.float32)
         + bq_ref[...])                                  # (B, D)

    # Attention scores + masked softmax over the sequence axis -- computed
    # before the recurrence so the context is accumulated online.
    # (For much larger S*B this cross-lane reduce should become an MXU
    #  contraction; negligible here.)
    e = jnp.sum(x * q[None, :, :], axis=-1, keepdims=True)       # (S, B, 1)
    e = jnp.where(e == 0.0, -jnp.inf, e)                          # module's masking rule
    p = jnp.exp(e - jnp.max(e, axis=0, keepdims=True))
    a = p / jnp.sum(p, axis=0, keepdims=True)                     # (S, B, 1)
    a_ref[...] = a

    # Hoisted input projection: one (S*B, 2D) @ (2D, 8D) matmul covers both
    # directions and all four gates, biases folded in.  Row t*B+b already
    # pairs x[t, b] (forward gates) with x[S-1-t, b] (backward gates).
    xp = (jnp.dot(xpair.reshape(S * B, DD), wih_ref[...],
                  preferred_element_type=jnp.float32)
          + ball_ref[...])                               # (S*B, 8D)

    whh = whh_ref[...]                                   # (2D, 8D) bf16

    h = jnp.zeros((B, DD), jnp.float32)                  # [h_f | h_b]
    c = jnp.zeros((B, DD), jnp.float32)                  # [c_f | c_b]
    ctx_f = jnp.zeros((B, D), jnp.float32)
    ctx_b = jnp.zeros((B, D), jnp.float32)

    # Fully (statically) unrolled fused recurrence: 1 bf16 MXU matmul + 3 EUP
    # pushes per step on the serial chain.
    for t in range(S):
        tb = S - 1 - t
        xg = xp[t * B:(t + 1) * B, :]                    # (B, 8D); whole sublane tile (B == 8)
        gates = xg + jnp.dot(h.astype(jnp.bfloat16), whh,
                             preferred_element_type=jnp.float32)       # (B, 8D) f32
        sig = 0.5 * jnp.tanh(0.5 * gates[:, :6 * D]) + 0.5   # [i|f|o], both dirs, 1 EUP push
        g = jnp.tanh(gates[:, 6 * D:])                        # [g_f | g_b]
        i_g = sig[:, :DD]
        f_g = sig[:, DD:2 * DD]
        o_g = sig[:, 2 * DD:]
        c = f_g * c + i_g * g
        h = o_g * jnp.tanh(c)
        # Online attention-weighted context (off the recurrent critical path).
        ctx_f = ctx_f + a[t] * h[:, :D]
        ctx_b = ctx_b + a[tb] * h[:, D:]

    # logits = classifier(concat(ctx_fwd, ctx_bwd))
    ctx = jnp.concatenate([ctx_f, ctx_b], axis=-1)        # (B, 2D)
    logits_ref[...] = (
        jnp.dot(ctx, wclsT_ref[...], preferred_element_type=jnp.float32)
        + bc_ref[...])


def bilstm_attention(x, mask, params):
    """x: (S, B, D) float32, mask: (S, B) float32. Returns (logits (B, dimout), a (S, B, 1))."""
    S, B, D = x.shape
    dimout = params["w_cls"].shape[0]

    # Pad batch to a multiple of 8 (sublane tile) with copies of element 0
    # (benign finite values; padded outputs are sliced off below).
    Bp = max(8, ((B + 7) // 8) * 8)
    pad = Bp - B
    if pad:
        x_p = jnp.concatenate([x, jnp.broadcast_to(x[:, :1], (S, pad, D))], axis=1)
        m_p = jnp.concatenate([mask, jnp.broadcast_to(mask[:, :1], (S, pad))], axis=1)
    else:
        x_p, m_p = x, mask

    # Pair each forward-time row with its backward-time counterpart so one
    # matmul produces both directions' gate projections.
    x_pair = jnp.concatenate([x_p, x_p[::-1]], axis=-1)   # (S, Bp, 2D)

    def split_gates(w):
        # PyTorch (4D, D) with row blocks [i; f; g; o] -> transposed per-gate blocks.
        i, f, g, o = jnp.split(w, 4, axis=0)
        return i.T, f.T, o.T, g.T                         # each (D, D), (in, out)

    def fuse_w(w_f, w_b):
        # Block-diagonal fused weights: rows 0:D act on the forward input/state,
        # rows D:2D on the backward one; columns [i_f i_b f_f f_b o_f o_b g_f g_b].
        i_f, f_f, o_f, g_f = split_gates(w_f)
        i_b, f_b, o_b, g_b = split_gates(w_b)
        Z = jnp.zeros((D, D), jnp.float32)
        top = jnp.concatenate([i_f, Z, f_f, Z, o_f, Z, g_f, Z], axis=1)
        bot = jnp.concatenate([Z, i_b, Z, f_b, Z, o_b, Z, g_b], axis=1)
        return jnp.concatenate([top, bot], axis=0)        # (2D, 8D)

    def fuse_b(bi_f, bh_f, bi_b, bh_b):
        bf, bb = bi_f + bh_f, bi_b + bh_b
        i_f, f_f, g_f, o_f = jnp.split(bf, 4)
        i_b, f_b, g_b, o_b = jnp.split(bb, 4)
        return jnp.concatenate([i_f, i_b, f_f, f_b, o_f, o_b, g_f, g_b])[None, :]

    wih = fuse_w(params["w_ih_f"], params["w_ih_b"])                          # (2D, 8D) f32
    ball = fuse_b(params["b_ih_f"], params["b_hh_f"],
                  params["b_ih_b"], params["b_hh_b"])                         # (1, 8D)  f32
    whh = fuse_w(params["w_hh_f"], params["w_hh_b"]).astype(jnp.bfloat16)     # (2D, 8D) bf16

    vmem = pl.BlockSpec(memory_space=pltpu.MemorySpace.VMEM)
    logits, a = pl.pallas_call(
        _bilstm_attention_kernel,
        out_shape=(
            jax.ShapeDtypeStruct((Bp, dimout), jnp.float32),
            jax.ShapeDtypeStruct((S, Bp, 1), jnp.float32),
        ),
        in_specs=[vmem] * 9,
        out_specs=(vmem, vmem),
    )(
        x_pair,
        m_p[:, :, None],
        params["w_q"].T,
        params["b_q"][None, :],
        wih,
        ball,
        whh,
        params["w_cls"].T,
        params["b_cls"][None, :],
    )
    return logits[:B], a[:, :B]


def reference(x, mask, params):
    """Pure-JAX mirror of the PyTorch forward (PyTorch weight layout, f32)."""
    S, B, D = x.shape
    x_avg = jnp.sum(x, axis=0) / jnp.sum(mask[:, :, None], axis=0)
    q = x_avg @ params["w_q"].T + params["b_q"]

    def lstm_dir(xs, w_ih, w_hh, b_ih, b_hh):
        def step(carry, xt):
            h, c = carry
            g = xt @ w_ih.T + b_ih + h @ w_hh.T + b_hh
            i, f, gg, o = jnp.split(g, 4, axis=-1)
            c = jax.nn.sigmoid(f) * c + jax.nn.sigmoid(i) * jnp.tanh(gg)
            h = jax.nn.sigmoid(o) * jnp.tanh(c)
            return (h, c), h
        init = (jnp.zeros((B, D), jnp.float32), jnp.zeros((B, D), jnp.float32))
        _, hs = jax.lax.scan(step, init, xs)
        return hs

    h_f = lstm_dir(x, params["w_ih_f"], params["w_hh_f"], params["b_ih_f"], params["b_hh_f"])
    h_b = lstm_dir(x[::-1], params["w_ih_b"], params["w_hh_b"],
                   params["b_ih_b"], params["b_hh_b"])[::-1]
    ht = jnp.concatenate([h_f, h_b], axis=-1)                 # (S, B, 2D)

    e = jnp.einsum("sbd,bd->sb", x, q)[:, :, None]            # (S, B, 1)
    e = jnp.where(e == 0.0, -jnp.inf, e)
    a = jax.nn.softmax(e, axis=0)
    c = jnp.sum(a * ht, axis=0)                               # (B, 2D)
    logits = c @ params["w_cls"].T + params["b_cls"]
    return logits, a


def init_params(key, dimbed, dimout):
    D = dimbed
    ks = jax.random.split(key, 12)
    u = lambda k, shape, s: jax.random.uniform(k, shape, jnp.float32, -s, s)
    s = 1.0 / np.sqrt(D)
    s2 = 1.0 / np.sqrt(2 * D)
    return {
        "w_q": u(ks[0], (D, D), s), "b_q": u(ks[1], (D,), s),
        "w_ih_f": u(ks[2], (4 * D, D), s), "w_hh_f": u(ks[3], (4 * D, D), s),
        "b_ih_f": u(ks[4], (4 * D,), s), "b_hh_f": u(ks[5], (4 * D,), s),
        "w_ih_b": u(ks[6], (4 * D, D), s), "w_hh_b": u(ks[7], (4 * D, D), s),
        "b_ih_b": u(ks[8], (4 * D,), s), "b_hh_b": u(ks[9], (4 * D,), s),
        # TODO(synk): the original module declares nn.Linear(dimbed, dimout) but
        # feeds it the 2*dimbed bi-LSTM context (a latent shape bug); the
        # classifier here takes 2*dimbed so the forward is well-defined.
        "w_cls": u(ks[10], (dimout, 2 * D), s2), "b_cls": u(ks[11], (dimout,), s2),
    }


if __name__ == "__main__":
    S, B, D, DIMOUT = 8, 4, 32, 5
    key = jax.random.PRNGKey(0)
    kx, kp = jax.random.split(key)

    lengths = jnp.array([8, 5, 6, 3], dtype=jnp.int32)
    mask = (jnp.arange(S)[:, None] < lengths[None, :]).astype(jnp.float32)   # (S, B)
    x = jax.random.normal(kx, (S, B, D), jnp.float32) * mask[:, :, None]     # padded positions = 0

    params = init_params(kp, D, DIMOUT)

    logits, a = jax.jit(bilstm_attention)(x, mask, params)
    jax.block_until_ready((logits, a))

    logits_ref, a_ref = reference(x, mask, params)
    np.testing.assert_allclose(np.asarray(logits), np.asarray(logits_ref), rtol=5e-3, atol=5e-3)
    np.testing.assert_allclose(np.asarray(a), np.asarray(a_ref), rtol=5e-3, atol=5e-3)
    print("KERNEL_OK")
</pallas_src>

<mosaic_0001>
module attributes {stable_mosaic.version = 11 : i64} {
  func.func @_bilstm_attention_kernel(%arg0: memref<8x8x64xf32, #tpu.memory_space<vmem>>, %arg1: memref<8x8x1xf32, #tpu.memory_space<vmem>>, %arg2: memref<32x32xf32, #tpu.memory_space<vmem>>, %arg3: memref<1x32xf32, #tpu.memory_space<vmem>>, %arg4: memref<64x256xf32, #tpu.memory_space<vmem>>, %arg5: memref<1x256xf32, #tpu.memory_space<vmem>>, %arg6: memref<64x256xbf16, #tpu.memory_space<vmem>>, %arg7: memref<64x5xf32, #tpu.memory_space<vmem>>, %arg8: memref<1x5xf32, #tpu.memory_space<vmem>>, %arg9: memref<8x5xf32, #tpu.memory_space<vmem>>, %arg10: memref<8x8x1xf32, #tpu.memory_space<vmem>>) attributes {dimension_semantics = [], scalar_prefetch = 0 : i64, scratch_operands = 0 : i64, tpu.core_type = #tpu.core_type<tc>} {
    %c0 = arith.constant 0 : index
    %c0_0 = arith.constant 0 : index
    %c0_1 = arith.constant 0 : index
    %0 = vector.load %arg0[%c0, %c0_0, %c0_1] : memref<8x8x64xf32, #tpu.memory_space<vmem>>, vector<8x8x64xf32>
    %1 = vector.extract_strided_slice %0 {offsets = [0, 0, 0], sizes = [8, 8, 32], strides = [1, 1, 1]} : vector<8x8x64xf32> to vector<8x8x32xf32>
    %c0_2 = arith.constant 0 : index
    %c0_3 = arith.constant 0 : index
    %c0_4 = arith.constant 0 : index
    %2 = vector.load %arg1[%c0_2, %c0_3, %c0_4] : memref<8x8x1xf32, #tpu.memory_space<vmem>>, vector<8x8x1xf32>
    %cst = arith.constant dense<0.000000e+00> : vector<8x32xf32>
    %3 = vector.multi_reduction <add>, %1, %cst [0] : vector<8x8x32xf32> to vector<8x32xf32>
    %cst_5 = arith.constant dense<0.000000e+00> : vector<8x1xf32>
    %4 = vector.multi_reduction <add>, %2, %cst_5 [0] : vector<8x8x1xf32> to vector<8x1xf32>
    %5 = vector.broadcast %4 : vector<8x1xf32> to vector<8x32xf32>
    %6 = arith.divf %3, %5 : vector<8x32xf32>
    %c0_6 = arith.constant 0 : index
    %c0_7 = arith.constant 0 : index
    %7 = vector.load %arg2[%c0_6, %c0_7] : memref<32x32xf32, #tpu.memory_space<vmem>>, vector<32x32xf32>
    %cst_8 = arith.constant dense<0.000000e+00> : vector<8x32xf32>
    %8 = tpu.matmul %6, %7, %cst_8 {dimension_numbers = #tpu.dot_dimension_numbers<[1], [0], [0], [1], [0, 0, 1, 1], [], []>} : vector<8x32xf32>, vector<32x32xf32>, vector<8x32xf32> -> vector<8x32xf32>
    %c0_9 = arith.constant 0 : index
    %c0_10 = arith.constant 0 : index
    %9 = vector.load %arg3[%c0_9, %c0_10] : memref<1x32xf32, #tpu.memory_space<vmem>>, vector<1x32xf32>
    %10 = vector.broadcast %9 : vector<1x32xf32> to vector<8x32xf32>
    %11 = arith.addf %8, %10 : vector<8x32xf32>
    %12 = vector.shape_cast %11 : vector<8x32xf32> to vector<1x8x32xf32>
    %13 = vector.broadcast %12 : vector<1x8x32xf32> to vector<8x8x32xf32>
    %14 = arith.mulf %1, %13 : vector<8x8x32xf32>
    %cst_11 = arith.constant dense<0.000000e+00> : vector<8x8xf32>
    %15 = vector.multi_reduction <add>, %14, %cst_11 [2] : vector<8x8x32xf32> to vector<8x8xf32>
    %16 = vector.shape_cast %15 : vector<8x8xf32> to vector<8x8x1xf32>
    %cst_12 = arith.constant 0.000000e+00 : f32
    %17 = vector.broadcast %cst_12 : f32 to vector<8x8x1xf32>
    %18 = arith.cmpf oeq, %16, %17 : vector<8x8x1xf32>
    %cst_13 = arith.constant 0xFF800000 : f32
    %19 = vector.broadcast %cst_13 : f32 to vector<8x8x1xf32>
    %20 = arith.select %18, %19, %16 : vector<8x8x1xi1>, vector<8x8x1xf32>
    %cst_14 = arith.constant dense<0xFF800000> : vector<8x1xf32>
    %21 = vector.multi_reduction <maximumf>, %20, %cst_14 [0] : vector<8x8x1xf32> to vector<8x1xf32>
    %22 = vector.shape_cast %21 : vector<8x1xf32> to vector<1x8x1xf32>
    %23 = vector.broadcast %22 : vector<1x8x1xf32> to vector<8x8x1xf32>
    %24 = arith.subf %20, %23 : vector<8x8x1xf32>
    %25 = math.exp %24 : vector<8x8x1xf32>
    %cst_15 = arith.constant dense<0.000000e+00> : vector<8x1xf32>
    %26 = vector.multi_reduction <add>, %25, %cst_15 [0] : vector<8x8x1xf32> to vector<8x1xf32>
    %27 = vector.shape_cast %26 : vector<8x1xf32> to vector<1x8x1xf32>
    %28 = vector.broadcast %27 : vector<1x8x1xf32> to vector<8x8x1xf32>
    %29 = arith.divf %25, %28 : vector<8x8x1xf32>
    %c0_16 = arith.constant 0 : index
    %c0_17 = arith.constant 0 : index
    %c0_18 = arith.constant 0 : index
    %30 = vector.load %arg10[%c0_16, %c0_17, %c0_18] : memref<8x8x1xf32, #tpu.memory_space<vmem>>, vector<8x8x1xf32>
    tpu.vector_store %arg10[%c0_16, %c0_17, %c0_18], %29 {strides = array<i32>} : memref<8x8x1xf32, #tpu.memory_space<vmem>>, vector<8x8x1xf32>,
    %31 = vector.shape_cast %0 : vector<8x8x64xf32> to vector<64x64xf32>
    %c0_19 = arith.constant 0 : index
    %c0_20 = arith.constant 0 : index
    %32 = vector.load %arg4[%c0_19, %c0_20] : memref<64x256xf32, #tpu.memory_space<vmem>>, vector<64x256xf32>
    %cst_21 = arith.constant dense<0.000000e+00> : vector<64x256xf32>
    %33 = tpu.matmul %31, %32, %cst_21 {dimension_numbers = #tpu.dot_dimension_numbers<[1], [0], [0], [1], [0, 0, 1, 1], [], []>} : vector<64x64xf32>, vector<64x256xf32>, vector<64x256xf32> -> vector<64x256xf32>
    %c0_22 = arith.constant 0 : index
    %c0_23 = arith.constant 0 : index
    %34 = vector.load %arg5[%c0_22, %c0_23] : memref<1x256xf32, #tpu.memory_space<vmem>>, vector<1x256xf32>
    %35 = vector.broadcast %34 : vector<1x256xf32> to vector<64x256xf32>
    %36 = arith.addf %33, %35 : vector<64x256xf32>
    %c0_24 = arith.constant 0 : index
    %c0_25 = arith.constant 0 : index
    %37 = vector.load %arg6[%c0_24, %c0_25] : memref<64x256xbf16, #tpu.memory_space<vmem>>, vector<64x256xbf16>
    %cst_26 = arith.constant 0.000000e+00 : f32
    %38 = vector.broadcast %cst_26 : f32 to vector<8x64xf32>
    %cst_27 = arith.constant 0.000000e+00 : f32
    %39 = vector.broadcast %cst_27 : f32 to vector<8x64xf32>
    %cst_28 = arith.constant 0.000000e+00 : f32
    %40 = vector.broadcast %cst_28 : f32 to vector<8x32xf32>
    %cst_29 = arith.constant 0.000000e+00 : f32
    %41 = vector.broadcast %cst_29 : f32 to vector<8x32xf32>
    %42 = vector.extract_strided_slice %36 {offsets = [0, 0], sizes = [8, 256], strides = [1, 1]} : vector<64x256xf32> to vector<8x256xf32>
    %43 = arith.truncf %38 : vector<8x64xf32> to vector<8x64xbf16>
    %cst_30 = arith.constant dense<0.000000e+00> : vector<8x256xf32>
    %44 = tpu.matmul %43, %37, %cst_30 {dimension_numbers = #tpu.dot_dimension_numbers<[1], [0], [0], [1], [0, 0, 1, 1], [], []>} : vector<8x64xbf16>, vector<64x256xbf16>, vector<8x256xf32> -> vector<8x256xf32>
    %45 = arith.addf %42, %44 : vector<8x256xf32>
    %46 = vector.extract_strided_slice %45 {offsets = [0, 0], sizes = [8, 192], strides = [1, 1]} : vector<8x256xf32> to vector<8x192xf32>
    %cst_31 = arith.constant 5.000000e-01 : f32
    %47 = vector.broadcast %cst_31 : f32 to vector<8x192xf32>
    %48 = arith.mulf %47, %46 : vector<8x192xf32>
    %49 = math.tanh %48 : vector<8x192xf32>
    %cst_32 = arith.constant 5.000000e-01 : f32
    %50 = vector.broadcast %cst_32 : f32 to vector<8x192xf32>
    %51 = arith.mulf %50, %49 : vector<8x192xf32>
    %cst_33 = arith.constant 5.000000e-01 : f32
    %52 = vector.broadcast %cst_33 : f32 to vector<8x192xf32>
    %53 = arith.addf %51, %52 : vector<8x192xf32>
    %54 = vector.extract_strided_slice %45 {offsets = [0, 192], sizes = [8, 64], strides = [1, 1]} : vector<8x256xf32> to vector<8x64xf32>
    %55 = math.tanh %54 : vector<8x64xf32>
    %56 = vector.extract_strided_slice %53 {offsets = [0, 0], sizes = [8, 64], strides = [1, 1]} : vector<8x192xf32> to vector<8x64xf32>
    %57 = vector.extract_strided_slice %53 {offsets = [0, 64], sizes = [8, 64], strides = [1, 1]} : vector<8x192xf32> to vector<8x64xf32>
    %58 = vector.extract_strided_slice %53 {offsets = [0, 128], sizes = [8, 64], strides = [1, 1]} : vector<8x192xf32> to vector<8x64xf32>
    %59 = arith.mulf %57, %39 : vector<8x64xf32>
    %60 = arith.mulf %56, %55 : vector<8x64xf32>
    %61 = arith.addf %59, %60 : vector<8x64xf32>
    %62 = math.tanh %61 : vector<8x64xf32>
    %63 = arith.mulf %58, %62 : vector<8x64xf32>
    %64 = vector.extract_strided_slice %29 {offsets = [0, 0, 0], sizes = [1, 8, 1], strides = [1, 1, 1]} : vector<8x8x1xf32> to vector<1x8x1xf32>
    %65 = vector.shape_cast %64 : vector<1x8x1xf32> to vector<8x1xf32>
    %66 = vector.extract_strided_slice %63 {offsets = [0, 0], sizes = [8, 32], strides = [1, 1]} : vector<8x64xf32> to vector<8x32xf32>
    %67 = vector.broadcast %65 : vector<8x1xf32> to vector<8x32xf32>
    %68 = arith.mulf %67, %66 : vector<8x32xf32>
    %69 = arith.addf %40, %68 : vector<8x32xf32>
    %70 = vector.extract_strided_slice %29 {offsets = [7, 0, 0], sizes = [1, 8, 1], strides = [1, 1, 1]} : vector<8x8x1xf32> to vector<1x8x1xf32>
    %71 = vector.shape_cast %70 : vector<1x8x1xf32> to vector<8x1xf32>
    %72 = vector.extract_strided_slice %63 {offsets = [0, 32], sizes = [8, 32], strides = [1, 1]} : vector<8x64xf32> to vector<8x32xf32>
    %73 = vector.broadcast %71 : vector<8x1xf32> to vector<8x32xf32>
    %74 = arith.mulf %73, %72 : vector<8x32xf32>
    %75 = arith.addf %41, %74 : vector<8x32xf32>
    %76 = vector.extract_strided_slice %36 {offsets = [8, 0], sizes = [8, 256], strides = [1, 1]} : vector<64x256xf32> to vector<8x256xf32>
    %77 = arith.truncf %63 : vector<8x64xf32> to vector<8x64xbf16>
    %cst_34 = arith.constant dense<0.000000e+00> : vector<8x256xf32>
    %78 = tpu.matmul %77, %37, %cst_34 {dimension_numbers = #tpu.dot_dimension_numbers<[1], [0], [0], [1], [0, 0, 1, 1], [], []>} : vector<8x64xbf16>, vector<64x256xbf16>, vector<8x256xf32> -> vector<8x256xf32>
    %79 = arith.addf %76, %78 : vector<8x256xf32>
    %80 = vector.extract_strided_slice %79 {offsets = [0, 0], sizes = [8, 192], strides = [1, 1]} : vector<8x256xf32> to vector<8x192xf32>
    %cst_35 = arith.constant 5.000000e-01 : f32
    %81 = vector.broadcast %cst_35 : f32 to vector<8x192xf32>
    %82 = arith.mulf %81, %80 : vector<8x192xf32>
    %83 = math.tanh %82 : vector<8x192xf32>
    %cst_36 = arith.constant 5.000000e-01 : f32
    %84 = vector.broadcast %cst_36 : f32 to vector<8x192xf32>
    %85 = arith.mulf %84, %83 : vector<8x192xf32>
    %cst_37 = arith.constant 5.000000e-01 : f32
    %86 = vector.broadcast %cst_37 : f32 to vector<8x192xf32>
    %87 = arith.addf %85, %86 : vector<8x192xf32>
    %88 = vector.extract_strided_slice %79 {offsets = [0, 192], sizes = [8, 64], strides = [1, 1]} : vector<8x256xf32> to vector<8x64xf32>
    %89 = math.tanh %88 : vector<8x64xf32>
    %90 = vector.extract_strided_slice %87 {offsets = [0, 0], sizes = [8, 64], strides = [1, 1]} : vector<8x192xf32> to vector<8x64xf32>
    %91 = vector.extract_strided_slice %87 {offsets = [0, 64], sizes = [8, 64], strides = [1, 1]} : vector<8x192xf32> to vector<8x64xf32>
    %92 = vector.extract_strided_slice %87 {offsets = [0, 128], sizes = [8, 64], strides = [1, 1]} : vector<8x192xf32> to vector<8x64xf32>
    %93 = arith.mulf %91, %61 : vector<8x64xf32>
    %94 = arith.mulf %90, %89 : vector<8x64xf32>
    %95 = arith.addf %93, %94 : vector<8x64xf32>
    %96 = math.tanh %95 : vector<8x64xf32>
    %97 = arith.mulf %92, %96 : vector<8x64xf32>
    %98 = vector.extract_strided_slice %29 {offsets = [1, 0, 0], sizes = [1, 8, 1], strides = [1, 1, 1]} : vector<8x8x1xf32> to vector<1x8x1xf32>
    %99 = vector.shape_cast %98 : vector<1x8x1xf32> to vector<8x1xf32>
    %100 = vector.extract_strided_slice %97 {offsets = [0, 0], sizes = [8, 32], strides = [1, 1]} : vector<8x64xf32> to vector<8x32xf32>
    %101 = vector.broadcast %99 : vector<8x1xf32> to vector<8x32xf32>
    %102 = arith.mulf %101, %100 : vector<8x32xf32>
    %103 = arith.addf %69, %102 : vector<8x32xf32>
    %104 = vector.extract_strided_slice %29 {offsets = [6, 0, 0], sizes = [1, 8, 1], strides = [1, 1, 1]} : vector<8x8x1xf32> to vector<1x8x1xf32>
    %105 = vector.shape_cast %104 : vector<1x8x1xf32> to vector<8x1xf32>
    %106 = vector.extract_strided_slice %97 {offsets = [0, 32], sizes = [8, 32], strides = [1, 1]} : vector<8x64xf32> to vector<8x32xf32>
    %107 = vector.broadcast %105 : vector<8x1xf32> to vector<8x32xf32>
    %108 = arith.mulf %107, %106 : vector<8x32xf32>
    %109 = arith.addf %75, %108 : vector<8x32xf32>
    %110 = vector.extract_strided_slice %36 {offsets = [16, 0], sizes = [8, 256], strides = [1, 1]} : vector<64x256xf32> to vector<8x256xf32>
    %111 = arith.truncf %97 : vector<8x64xf32> to vector<8x64xbf16>
    %cst_38 = arith.constant dense<0.000000e+00> : vector<8x256xf32>
    %112 = tpu.matmul %111, %37, %cst_38 {dimension_numbers = #tpu.dot_dimension_numbers<[1], [0], [0], [1], [0, 0, 1, 1], [], []>} : vector<8x64xbf16>, vector<64x256xbf16>, vector<8x256xf32> -> vector<8x256xf32>
    %113 = arith.addf %110, %112 : vector<8x256xf32>
    %114 = vector.extract_strided_slice %113 {offsets = [0, 0], sizes = [8, 192], strides = [1, 1]} : vector<8x256xf32> to vector<8x192xf32>
    %cst_39 = arith.constant 5.000000e-01 : f32
    %115 = vector.broadcast %cst_39 : f32 to vector<8x192xf32>
    %116 = arith.mulf %115, %114 : vector<8x192xf32>
    %117 = math.tanh %116 : vector<8x192xf32>
    %cst_40 = arith.constant 5.000000e-01 : f32
    %118 = vector.broadcast %cst_40 : f32 to vector<8x192xf32>
    %119 = arith.mulf %118, %117 : vector<8x192xf32>
    %cst_41 = arith.constant 5.000000e-01 : f32
    %120 = vector.broadcast %cst_41 : f32 to vector<8x192xf32>
    %121 = arith.addf %119, %120 : vector<8x192xf32>
    %122 = vector.extract_strided_slice %113 {offsets = [0, 192], sizes = [8, 64], strides = [1, 1]} : vector<8x256xf32> to vector<8x64xf32>
    %123 = math.tanh %122 : vector<8x64xf32>
    %124 = vector.extract_strided_slice %121 {offsets = [0, 0], sizes = [8, 64], strides = [1, 1]} : vector<8x192xf32> to vector<8x64xf32>
    %125 = vector.extract_strided_slice %121 {offsets = [0, 64], sizes = [8, 64], strides = [1, 1]} : vector<8x192xf32> to vector<8x64xf32>
    %126 = vector.extract_strided_slice %121 {offsets = [0, 128], sizes = [8, 64], strides = [1, 1]} : vector<8x192xf32> to vector<8x64xf32>
    %127 = arith.mulf %125, %95 : vector<8x64xf32>
    %128 = arith.mulf %124, %123 : vector<8x64xf32>
    %129 = arith.addf %127, %128 : vector<8x64xf32>
    %130 = math.tanh %129 : vector<8x64xf32>
    %131 = arith.mulf %126, %130 : vector<8x64xf32>
    %132 = vector.extract_strided_slice %29 {offsets = [2, 0, 0], sizes = [1, 8, 1], strides = [1, 1, 1]} : vector<8x8x1xf32> to vector<1x8x1xf32>
    %133 = vector.shape_cast %132 : vector<1x8x1xf32> to vector<8x1xf32>
    %134 = vector.extract_strided_slice %131 {offsets = [0, 0], sizes = [8, 32], strides = [1, 1]} : vector<8x64xf32> to vector<8x32xf32>
    %135 = vector.broadcast %133 : vector<8x1xf32> to vector<8x32xf32>
    %136 = arith.mulf %135, %134 : vector<8x32xf32>
    %137 = arith.addf %103, %136 : vector<8x32xf32>
    %138 = vector.extract_strided_slice %29 {offsets = [5, 0, 0], sizes = [1, 8, 1], strides = [1, 1, 1]} : vector<8x8x1xf32> to vector<1x8x1xf32>
    %139 = vector.shape_cast %138 : vector<1x8x1xf32> to vector<8x1xf32>
    %140 = vector.extract_strided_slice %131 {offsets = [0, 32], sizes = [8, 32], strides = [1, 1]} : vector<8x64xf32> to vector<8x32xf32>
    %141 = vector.broadcast %139 : vector<8x1xf32> to vector<8x32xf32>
    %142 = arith.mulf %141, %140 : vector<8x32xf32>
    %143 = arith.addf %109, %142 : vector<8x32xf32>
    %144 = vector.extract_strided_slice %36 {offsets = [24, 0], sizes = [8, 256], strides = [1, 1]} : vector<64x256xf32> to vector<8x256xf32>
    %145 = arith.truncf %131 : vector<8x64xf32> to vector<8x64xbf16>
    %cst_42 = arith.constant dense<0.000000e+00> : vector<8x256xf32>
    %146 = tpu.matmul %145, %37, %cst_42 {dimension_numbers = #tpu.dot_dimension_numbers<[1], [0], [0], [1], [0, 0, 1, 1], [], []>} : vector<8x64xbf16>, vector<64x256xbf16>, vector<8x256xf32> -> vector<8x256xf32>
    %147 = arith.addf %144, %146 : vector<8x256xf32>
    %148 = vector.extract_strided_slice %147 {offsets = [0, 0], sizes = [8, 192], strides = [1, 1]} : vector<8x256xf32> to vector<8x192xf32>
    %cst_43 = arith.constant 5.000000e-01 : f32
    %149 = vector.broadcast %cst_43 : f32 to vector<8x192xf32>
    %150 = arith.mulf %149, %148 : vector<8x192xf32>
    %151 = math.tanh %150 : vector<8x192xf32>
    %cst_44 = arith.constant 5.000000e-01 : f32
    %152 = vector.broadcast %cst_44 : f32 to vector<8x192xf32>
    %153 = arith.mulf %152, %151 : vector<8x192xf32>
    %cst_45 = arith.constant 5.000000e-01 : f32
    %154 = vector.broadcast %cst_45 : f32 to vector<8x192xf32>
    %155 = arith.addf %153, %154 : vector<8x192xf32>
    %156 = vector.extract_strided_slice %147 {offsets = [0, 192], sizes = [8, 64], strides = [1, 1]} : vector<8x256xf32> to vector<8x64xf32>
    %157 = math.tanh %156 : vector<8x64xf32>
    %158 = vector.extract_strided_slice %155 {offsets = [0, 0], sizes = [8, 64], strides = [1, 1]} : vector<8x192xf32> to vector<8x64xf32>
    %159 = vector.extract_strided_slice %155 {offsets = [0, 64], sizes = [8, 64], strides = [1, 1]} : vector<8x192xf32> to vector<8x64xf32>
    %160 = vector.extract_strided_slice %155 {offsets = [0, 128], sizes = [8, 64], strides = [1, 1]} : vector<8x192xf32> to vector<8x64xf32>
    %161 = arith.mulf %159, %129 : vector<8x64xf32>
    %162 = arith.mulf %158, %157 : vector<8x64xf32>
    %163 = arith.addf %161, %162 : vector<8x64xf32>
    %164 = math.tanh %163 : vector<8x64xf32>
    %165 = arith.mulf %160, %164 : vector<8x64xf32>
    %166 = vector.extract_strided_slice %29 {offsets = [3, 0, 0], sizes = [1, 8, 1], strides = [1, 1, 1]} : vector<8x8x1xf32> to vector<1x8x1xf32>
    %167 = vector.shape_cast %166 : vector<1x8x1xf32> to vector<8x1xf32>
    %168 = vector.extract_strided_slice %165 {offsets = [0, 0], sizes = [8, 32], strides = [1, 1]} : vector<8x64xf32> to vector<8x32xf32>
    %169 = vector.broadcast %167 : vector<8x1xf32> to vector<8x32xf32>
    %170 = arith.mulf %169, %168 : vector<8x32xf32>
    %171 = arith.addf %137, %170 : vector<8x32xf32>
    %172 = vector.extract_strided_slice %29 {offsets = [4, 0, 0], sizes = [1, 8, 1], strides = [1, 1, 1]} : vector<8x8x1xf32> to vector<1x8x1xf32>
    %173 = vector.shape_cast %172 : vector<1x8x1xf32> to vector<8x1xf32>
    %174 = vector.extract_strided_slice %165 {offsets = [0, 32], sizes = [8, 32], strides = [1, 1]} : vector<8x64xf32> to vector<8x32xf32>
    %175 = vector.broadcast %173 : vector<8x1xf32> to vector<8x32xf32>
    %176 = arith.mulf %175, %174 : vector<8x32xf32>
    %177 = arith.addf %143, %176 : vector<8x32xf32>
    %178 = vector.extract_strided_slice %36 {offsets = [32, 0], sizes = [8, 256], strides = [1, 1]} : vector<64x256xf32> to vector<8x256xf32>
    %179 = arith.truncf %165 : vector<8x64xf32> to vector<8x64xbf16>
    %cst_46 = arith.constant dense<0.000000e+00> : vector<8x256xf32>
    %180 = tpu.matmul %179, %37, %cst_46 {dimension_numbers = #tpu.dot_dimension_numbers<[1], [0], [0], [1], [0, 0, 1, 1], [], []>} : vector<8x64xbf16>, vector<64x256xbf16>, vector<8x256xf32> -> vector<8x256xf32>
    %181 = arith.addf %178, %180 : vector<8x256xf32>
    %182 = vector.extract_strided_slice %181 {offsets = [0, 0], sizes = [8, 192], strides = [1, 1]} : vector<8x256xf32> to vector<8x192xf32>
    %cst_47 = arith.constant 5.000000e-01 : f32
    %183 = vector.broadcast %cst_47 : f32 to vector<8x192xf32>
    %184 = arith.mulf %183, %182 : vector<8x192xf32>
    %185 = math.tanh %184 : vector<8x192xf32>
    %cst_48 = arith.constant 5.000000e-01 : f32
    %186 = vector.broadcast %cst_48 : f32 to vector<8x192xf32>
    %187 = arith.mulf %186, %185 : vector<8x192xf32>
    %cst_49 = arith.constant 5.000000e-01 : f32
    %188 = vector.broadcast %cst_49 : f32 to vector<8x192xf32>
    %189 = arith.addf %187, %188 : vector<8x192xf32>
    %190 = vector.extract_strided_slice %181 {offsets = [0, 192], sizes = [8, 64], strides = [1, 1]} : vector<8x256xf32> to vector<8x64xf32>
    %191 = math.tanh %190 : vector<8x64xf32>
    %192 = vector.extract_strided_slice %189 {offsets = [0, 0], sizes = [8, 64], strides = [1, 1]} : vector<8x192xf32> to vector<8x64xf32>
    %193 = vector.extract_strided_slice %189 {offsets = [0, 64], sizes = [8, 64], strides = [1, 1]} : vector<8x192xf32> to vector<8x64xf32>
    %194 = vector.extract_strided_slice %189 {offsets = [0, 128], sizes = [8, 64], strides = [1, 1]} : vector<8x192xf32> to vector<8x64xf32>
    %195 = arith.mulf %193, %163 : vector<8x64xf32>
    %196 = arith.mulf %192, %191 : vector<8x64xf32>
    %197 = arith.addf %195, %196 : vector<8x64xf32>
    %198 = math.tanh %197 : vector<8x64xf32>
    %199 = arith.mulf %194, %198 : vector<8x64xf32>
    %200 = vector.extract_strided_slice %29 {offsets = [4, 0, 0], sizes = [1, 8, 1], strides = [1, 1, 1]} : vector<8x8x1xf32> to vector<1x8x1xf32>
    %201 = vector.shape_cast %200 : vector<1x8x1xf32> to vector<8x1xf32>
    %202 = vector.extract_strided_slice %199 {offsets = [0, 0], sizes = [8, 32], strides = [1, 1]} : vector<8x64xf32> to vector<8x32xf32>
    %203 = vector.broadcast %201 : vector<8x1xf32> to vector<8x32xf32>
    %204 = arith.mulf %203, %202 : vector<8x32xf32>
    %205 = arith.addf %171, %204 : vector<8x32xf32>
    %206 = vector.extract_strided_slice %29 {offsets = [3, 0, 0], sizes = [1, 8, 1], strides = [1, 1, 1]} : vector<8x8x1xf32> to vector<1x8x1xf32>
    %207 = vector.shape_cast %206 : vector<1x8x1xf32> to vector<8x1xf32>
    %208 = vector.extract_strided_slice %199 {offsets = [0, 32], sizes = [8, 32], strides = [1, 1]} : vector<8x64xf32> to vector<8x32xf32>
    %209 = vector.broadcast %207 : vector<8x1xf32> to vector<8x32xf32>
    %210 = arith.mulf %209, %208 : vector<8x32xf32>
    %211 = arith.addf %177, %210 : vector<8x32xf32>
    %212 = vector.extract_strided_slice %36 {offsets = [40, 0], sizes = [8, 256], strides = [1, 1]} : vector<64x256xf32> to vector<8x256xf32>
    %213 = arith.truncf %199 : vector<8x64xf32> to vector<8x64xbf16>
    %cst_50 = arith.constant dense<0.000000e+00> : vector<8x256xf32>
    %214 = tpu.matmul %213, %37, %cst_50 {dimension_numbers = #tpu.dot_dimension_numbers<[1], [0], [0], [1], [0, 0, 1, 1], [], []>} : vector<8x64xbf16>, vector<64x256xbf16>, vector<8x256xf32> -> vector<8x256xf32>
    %215 = arith.addf %212, %214 : vector<8x256xf32>
    %216 = vector.extract_strided_slice %215 {offsets = [0, 0], sizes = [8, 192], strides = [1, 1]} : vector<8x256xf32> to vector<8x192xf32>
    %cst_51 = arith.constant 5.000000e-01 : f32
    %217 = vector.broadcast %cst_51 : f32 to vector<8x192xf32>
    %218 = arith.mulf %217, %216 : vector<8x192xf32>
    %219 = math.tanh %218 : vector<8x192xf32>
    %cst_52 = arith.constant 5.000000e-01 : f32
    %220 = vector.broadcast %cst_52 : f32 to vector<8x192xf32>
    %221 = arith.mulf %220, %219 : vector<8x192xf32>
    %cst_53 = arith.constant 5.000000e-01 : f32
    %222 = vector.broadcast %cst_53 : f32 to vector<8x192xf32>
    %223 = arith.addf %221, %222 : vector<8x192xf32>
    %224 = vector.extract_strided_slice %215 {offsets = [0, 192], sizes = [8, 64], strides = [1, 1]} : vector<8x256xf32> to vector<8x64xf32>
    %225 = math.tanh %224 : vector<8x64xf32>
    %226 = vector.extract_strided_slice %223 {offsets = [0, 0], sizes = [8, 64], strides = [1, 1]} : vector<8x192xf32> to vector<8x64xf32>
    %227 = vector.extract_strided_slice %223 {offsets = [0, 64], sizes = [8, 64], strides = [1, 1]} : vector<8x192xf32> to vector<8x64xf32>
    %228 = vector.extract_strided_slice %223 {offsets = [0, 128], sizes = [8, 64], strides = [1, 1]} : vector<8x192xf32> to vector<8x64xf32>
    %229 = arith.mulf %227, %197 : vector<8x64xf32>
    %230 = arith.mulf %226, %225 : vector<8x64xf32>
    %231 = arith.addf %229, %230 : vector<8x64xf32>
    %232 = math.tanh %231 : vector<8x64xf32>
    %233 = arith.mulf %228, %232 : vector<8x64xf32>
    %234 = vector.extract_strided_slice %29 {offsets = [5, 0, 0], sizes = [1, 8, 1], strides = [1, 1, 1]} : vector<8x8x1xf32> to vector<1x8x1xf32>
    %235 = vector.shape_cast %234 : vector<1x8x1xf32> to vector<8x1xf32>
    %236 = vector.extract_strided_slice %233 {offsets = [0, 0], sizes = [8, 32], strides = [1, 1]} : vector<8x64xf32> to vector<8x32xf32>
    %237 = vector.broadcast %235 : vector<8x1xf32> to vector<8x32xf32>
    %238 = arith.mulf %237, %236 : vector<8x32xf32>
    %239 = arith.addf %205, %238 : vector<8x32xf32>
    %240 = vector.extract_strided_slice %29 {offsets = [2, 0, 0], sizes = [1, 8, 1], strides = [1, 1, 1]} : vector<8x8x1xf32> to vector<1x8x1xf32>
    %241 = vector.shape_cast %240 : vector<1x8x1xf32> to vector<8x1xf32>
    %242 = vector.extract_strided_slice %233 {offsets = [0, 32], sizes = [8, 32], strides = [1, 1]} : vector<8x64xf32> to vector<8x32xf32>
    %243 = vector.broadcast %241 : vector<8x1xf32> to vector<8x32xf32>
    %244 = arith.mulf %243, %242 : vector<8x32xf32>
    %245 = arith.addf %211, %244 : vector<8x32xf32>
    %246 = vector.extract_strided_slice %36 {offsets = [48, 0], sizes = [8, 256], strides = [1, 1]} : vector<64x256xf32> to vector<8x256xf32>
    %247 = arith.truncf %233 : vector<8x64xf32> to vector<8x64xbf16>
    %cst_54 = arith.constant dense<0.000000e+00> : vector<8x256xf32>
    %248 = tpu.matmul %247, %37, %cst_54 {dimension_numbers = #tpu.dot_dimension_numbers<[1], [0], [0], [1], [0, 0, 1, 1], [], []>} : vector<8x64xbf16>, vector<64x256xbf16>, vector<8x256xf32> -> vector<8x256xf32>
    %249 = arith.addf %246, %248 : vector<8x256xf32>
    %250 = vector.extract_strided_slice %249 {offsets = [0, 0], sizes = [8, 192], strides = [1, 1]} : vector<8x256xf32> to vector<8x192xf32>
    %cst_55 = arith.constant 5.000000e-01 : f32
    %251 = vector.broadcast %cst_55 : f32 to vector<8x192xf32>
    %252 = arith.mulf %251, %250 : vector<8x192xf32>
    %253 = math.tanh %252 : vector<8x192xf32>
    %cst_56 = arith.constant 5.000000e-01 : f32
    %254 = vector.broadcast %cst_56 : f32 to vector<8x192xf32>
    %255 = arith.mulf %254, %253 : vector<8x192xf32>
    %cst_57 = arith.constant 5.000000e-01 : f32
    %256 = vector.broadcast %cst_57 : f32 to vector<8x192xf32>
    %257 = arith.addf %255, %256 : vector<8x192xf32>
    %258 = vector.extract_strided_slice %249 {offsets = [0, 192], sizes = [8, 64], strides = [1, 1]} : vector<8x256xf32> to vector<8x64xf32>
    %259 = math.tanh %258 : vector<8x64xf32>
    %260 = vector.extract_strided_slice %257 {offsets = [0, 0], sizes = [8, 64], strides = [1, 1]} : vector<8x192xf32> to vector<8x64xf32>
    %261 = vector.extract_strided_slice %257 {offsets = [0, 64], sizes = [8, 64], strides = [1, 1]} : vector<8x192xf32> to vector<8x64xf32>
    %262 = vector.extract_strided_slice %257 {offsets = [0, 128], sizes = [8, 64], strides = [1, 1]} : vector<8x192xf32> to vector<8x64xf32>
    %263 = arith.mulf %261, %231 : vector<8x64xf32>
    %264 = arith.mulf %260, %259 : vector<8x64xf32>
    %265 = arith.addf %263, %264 : vector<8x64xf32>
    %266 = math.tanh %265 : vector<8x64xf32>
    %267 = arith.mulf %262, %266 : vector<8x64xf32>
    %268 = vector.extract_strided_slice %29 {offsets = [6, 0, 0], sizes = [1, 8, 1], strides = [1, 1, 1]} : vector<8x8x1xf32> to vector<1x8x1xf32>
    %269 = vector.shape_cast %268 : vector<1x8x1xf32> to vector<8x1xf32>
    %270 = vector.extract_strided_slice %267 {offsets = [0, 0], sizes = [8, 32], strides = [1, 1]} : vector<8x64xf32> to vector<8x32xf32>
    %271 = vector.broadcast %269 : vector<8x1xf32> to vector<8x32xf32>
    %272 = arith.mulf %271, %270 : vector<8x32xf32>
    %273 = arith.addf %239, %272 : vector<8x32xf32>
    %274 = vector.extract_strided_slice %29 {offsets = [1, 0, 0], sizes = [1, 8, 1], strides = [1, 1, 1]} : vector<8x8x1xf32> to vector<1x8x1xf32>
    %275 = vector.shape_cast %274 : vector<1x8x1xf32> to vector<8x1xf32>
    %276 = vector.extract_strided_slice %267 {offsets = [0, 32], sizes = [8, 32], strides = [1, 1]} : vector<8x64xf32> to vector<8x32xf32>
    %277 = vector.broadcast %275 : vector<8x1xf32> to vector<8x32xf32>
    %278 = arith.mulf %277, %276 : vector<8x32xf32>
    %279 = arith.addf %245, %278 : vector<8x32xf32>
    %280 = vector.extract_strided_slice %36 {offsets = [56, 0], sizes = [8, 256], strides = [1, 1]} : vector<64x256xf32> to vector<8x256xf32>
    %281 = arith.truncf %267 : vector<8x64xf32> to vector<8x64xbf16>
    %cst_58 = arith.constant dense<0.000000e+00> : vector<8x256xf32>
    %282 = tpu.matmul %281, %37, %cst_58 {dimension_numbers = #tpu.dot_dimension_numbers<[1], [0], [0], [1], [0, 0, 1, 1], [], []>} : vector<8x64xbf16>, vector<64x256xbf16>, vector<8x256xf32> -> vector<8x256xf32>
    %283 = arith.addf %280, %282 : vector<8x256xf32>
    %284 = vector.extract_strided_slice %283 {offsets = [0, 0], sizes = [8, 192], strides = [1, 1]} : vector<8x256xf32> to vector<8x192xf32>
    %cst_59 = arith.constant 5.000000e-01 : f32
    %285 = vector.broadcast %cst_59 : f32 to vector<8x192xf32>
    %286 = arith.mulf %285, %284 : vector<8x192xf32>
    %287 = math.tanh %286 : vector<8x192xf32>
    %cst_60 = arith.constant 5.000000e-01 : f32
    %288 = vector.broadcast %cst_60 : f32 to vector<8x192xf32>
    %289 = arith.mulf %288, %287 : vector<8x192xf32>
    %cst_61 = arith.constant 5.000000e-01 : f32
    %290 = vector.broadcast %cst_61 : f32 to vector<8x192xf32>
    %291 = arith.addf %289, %290 : vector<8x192xf32>
    %292 = vector.extract_strided_slice %283 {offsets = [0, 192], sizes = [8, 64], strides = [1, 1]} : vector<8x256xf32> to vector<8x64xf32>
    %293 = math.tanh %292 : vector<8x64xf32>
    %294 = vector.extract_strided_slice %291 {offsets = [0, 0], sizes = [8, 64], strides = [1, 1]} : vector<8x192xf32> to vector<8x64xf32>
    %295 = vector.extract_strided_slice %291 {offsets = [0, 64], sizes = [8, 64], strides = [1, 1]} : vector<8x192xf32> to vector<8x64xf32>
    %296 = vector.extract_strided_slice %291 {offsets = [0, 128], sizes = [8, 64], strides = [1, 1]} : vector<8x192xf32> to vector<8x64xf32>
    %297 = arith.mulf %295, %265 : vector<8x64xf32>
    %298 = arith.mulf %294, %293 : vector<8x64xf32>
    %299 = arith.addf %297, %298 : vector<8x64xf32>
    %300 = math.tanh %299 : vector<8x64xf32>
    %301 = arith.mulf %296, %300 : vector<8x64xf32>
    %302 = vector.extract_strided_slice %29 {offsets = [7, 0, 0], sizes = [1, 8, 1], strides = [1, 1, 1]} : vector<8x8x1xf32> to vector<1x8x1xf32>
    %303 = vector.shape_cast %302 : vector<1x8x1xf32> to vector<8x1xf32>
    %304 = vector.extract_strided_slice %301 {offsets = [0, 0], sizes = [8, 32], strides = [1, 1]} : vector<8x64xf32> to vector<8x32xf32>
    %305 = vector.broadcast %303 : vector<8x1xf32> to vector<8x32xf32>
    %306 = arith.mulf %305, %304 : vector<8x32xf32>
    %307 = arith.addf %273, %306 : vector<8x32xf32>
    %308 = vector.extract_strided_slice %29 {offsets = [0, 0, 0], sizes = [1, 8, 1], strides = [1, 1, 1]} : vector<8x8x1xf32> to vector<1x8x1xf32>
    %309 = vector.shape_cast %308 : vector<1x8x1xf32> to vector<8x1xf32>
    %310 = vector.extract_strided_slice %301 {offsets = [0, 32], sizes = [8, 32], strides = [1, 1]} : vector<8x64xf32> to vector<8x32xf32>
    %311 = vector.broadcast %309 : vector<8x1xf32> to vector<8x32xf32>
    %312 = arith.mulf %311, %310 : vector<8x32xf32>
    %313 = arith.addf %279, %312 : vector<8x32xf32>
    %314 = tpu.concatenate %307, %313 in 1 : vector<8x32xf32>, vector<8x32xf32> -> vector<8x64xf32>
    %c0_62 = arith.constant 0 : index
    %c0_63 = arith.constant 0 : index
    %315 = vector.load %arg7[%c0_62, %c0_63] : memref<64x5xf32, #tpu.memory_space<vmem>>, vector<64x5xf32>
    %cst_64 = arith.constant dense<0.000000e+00> : vector<8x5xf32>
    %316 = tpu.matmul %314, %315, %cst_64 {dimension_numbers = #tpu.dot_dimension_numbers<[1], [0], [0], [1], [0, 0, 1, 1], [], []>} : vector<8x64xf32>, vector<64x5xf32>, vector<8x5xf32> -> vector<8x5xf32>
    %c0_65 = arith.constant 0 : index
    %c0_66 = arith.constant 0 : index
    %317 = vector.load %arg8[%c0_65, %c0_66] : memref<1x5xf32, #tpu.memory_space<vmem>>, vector<1x5xf32>
    %318 = vector.broadcast %317 : vector<1x5xf32> to vector<8x5xf32>
    %319 = arith.addf %316, %318 : vector<8x5xf32>
    %c0_67 = arith.constant 0 : index
    %c0_68 = arith.constant 0 : index
    %320 = vector.load %arg9[%c0_67, %c0_68] : memref<8x5xf32, #tpu.memory_space<vmem>>, vector<8x5xf32>
    tpu.vector_store %arg9[%c0_67, %c0_68], %319 {strides = array<i32>} : memref<8x5xf32, #tpu.memory_space<vmem>>, vector<8x5xf32>,
    return
  }
}

</mosaic_0001>

<bundles_post_ra>
// kernel: bilstm_attention.1
= control target key start
LH: loop header
LB: loop body
LE: loop exit
PB: predicated region body
PF: predicated region fallthrough
CT: control target
= control target key end

     0   :  { %vm67_vm0 = vcmask 7168   ;;  %v1412_v0 = vmov 0   ;;  %v1413_v24 = vmov 0.0|0.0   ;;  %vm1414_vm1 = vmmov 0   ;;  %s1998_s1 = inlined_call_operand.vmem [shape: f32[8,8,1], index: 1, kind: input, shape index: {}]   ;;  %s1999_s2 = inlined_call_operand.vmem [shape: f32[32,32], index: 2, kind: input, shape index: {}]   ;;  %s2000_s4 = inlined_call_operand.vmem [shape: f32[64,256], index: 4, kind: input, shape index: {}]   ;;  %s2001_s6 = inlined_call_operand.vmem [shape: bf16[64,256], index: 6, kind: input, shape index: {}]   ;;  %s2002_s0 = inlined_call_operand.vmem [shape: f32[8,8,64], index: 0, kind: input, shape index: {}]   ;;  %s2003_s5 = inlined_call_operand.vmem [shape: f32[1,256], index: 5, kind: input, shape index: {}]   ;;  %s2004_s3 = inlined_call_operand.vmem [shape: f32[1,32], index: 3, kind: input, shape index: {}]   ;;  %s2005_s7 = inlined_call_operand.vmem [shape: f32[64,5], index: 7, kind: input, shape index: {}]   ;;  %s2006_s10 = inlined_call_operand.vmem [shape: f32[8,8,1], index: 10, kind: output, shape index: {1}]   ;;  %s2007_s8 = inlined_call_operand.vmem [shape: f32[1,5], index: 8, kind: input, shape index: {}]   ;;  %s2008_s9 = inlined_call_operand.vmem [shape: f32[8,5], index: 9, kind: output, shape index: {0}]  }
   0x1   :  { %1315 = vset.pattern.permute.xlu0 %v1412_v0  ;;  %v43_v1 = vld [vmem:[%s1998_s1] sm:$0xff]  ;;  %v44_v2 = vld [vmem:[%s1998_s1 + $0x8] sm:$0xff]  ;;  %v45_v3 = vld [vmem:[%s1998_s1 + $0x10] sm:$0xff]  ;;  %1276 = vmatprep.subr.bf16.mxu0 %v1413_v24  ;;  %v1415_v28 = vmov 0.0   ;;  %vm305_vm2 = vcmask 523264   ;;  %vm51_vm3 = vcmask 261120  }
   0x2   :  { %v46_v4 = vld [vmem:[%s1998_s1 + $0x18] sm:$0xff]  ;;  %v68_v5 = vsel %vm67_vm0, %v43_v1, 0.0  ;;  %v69_v6 = vsel %vm67_vm0, %v44_v2, 0.0  ;;  %v71_v7 = vsel %vm67_vm0, %v45_v3, 0.0  ;;  %v47_v8 = vld [vmem:[%s1998_s1 + $0x20] sm:$0xff]  ;;  %v48_v11 = vld [vmem:[%s1998_s1 + $0x28] sm:$0xff]  ;;  %1254 = vmatprep.mubr.msk.f32.mxu0 %vm1414_vm1, %v1415_v28  ;;  %394 = vmatprep.mubr.f32.mxu1 %v1415_v28 }
   0x3   :  { %v70_v9 = vadd.f32 %v69_v6, %v68_v5  ;;  %v73_v10 = vsel %vm67_vm0, %v46_v4, 0.0  ;;  %v75_v13 = vsel %vm67_vm0, %v47_v8, 0.0  ;;  %v49_v14 = vld [vmem:[%s1998_s1 + $0x30] sm:$0xff]  ;;  %v77_v16 = vsel %vm67_vm0, %v48_v11, 0.0  ;;  %v50_v17 = vld [vmem:[%s1998_s1 + $0x38] sm:$0xff]  ;;  %v90_v25 = vld [vmem:[%s1999_s2] sm:$0xff] }
   0x4   :  { %v79_v19 = vsel %vm67_vm0, %v49_v14, 0.0  ;;  %v81_v21 = vsel %vm67_vm0, %v50_v17, 0.0  ;;  %v91_v26 = vld [vmem:[%s1999_s2 + $0x8] sm:$0xff]  ;;  %v92_v27 = vld [vmem:[%s1999_s2 + $0x10] sm:$0xff]  ;;  %v93_v30 = vld [vmem:[%s1999_s2 + $0x18] sm:$0xff]  ;;  %vm1195_vm12 = vcmask 39936  }
   0x5   :  { %v72_v12 = vadd.f32 %v71_v7, %v70_v9  ;;  %v1277_v29 = vpack.c.bf16 %v91_v26, %v90_v25  ;;  %v278_v31 = vld [vmem:[%s2000_s4 + $0x8] sm:$0xff]  ;;  %v280_v32 = vld [vmem:[%s2000_s4 + $0x18] sm:$0xff]  ;;  %v277_v34 = vld [vmem:[%s2000_s4] sm:$0xff]  ;;  %v1280_v36 = vpack.c.bf16 %v93_v30, %v92_v27 }
   0x6   :  { %v1282_v33 = vpack.c.bf16 %v280_v32, %v278_v31  ;;  %v279_v35 = vld [vmem:[%s2000_s4 + $0x10] sm:$0xff]  ;;  %v1536_v38 = vld [vmem:[%s2001_s6 + $0x4] ss:$8 sps:$4 sm:$0xff]   ;;  %v284_v40 = vld [vmem:[%s2000_s4 + $0x38] sm:$0xff] }
   0x7   :  { %v74_v15 = vadd.f32 %v73_v10, %v72_v12  ;;  %1278 = vmatpush3.bf16.msra.mxu0 %v1277_v29  ;;  %v1284_v37 = vpack.c.bf16 %v279_v35, %v277_v34  ;;  %v282_v39 = vld [vmem:[%s2000_s4 + $0x28] sm:$0xff]  ;;  %v281_v42 = vld [vmem:[%s2000_s4 + $0x20] sm:$0xff]  ;;  %v283_v43 = vld [vmem:[%s2000_s4 + $0x30] sm:$0xff]  ;;  %v295_v29 = vlaneseq }
   0x8   :  { %1279 = vmatprep.subr.bf16.mxu0 %v1413_v24  ;;  %1283 = vmatprep.subr.bf16.mxu1 %v1282_v33  ;;  %v1286_v41 = vpack.c.bf16 %v284_v40, %v282_v39  ;;  %v1288_v44 = vpack.c.bf16 %v283_v43, %v281_v42  ;;  %v286_v45 = vld [vmem:[%s2000_s4 + $0x48] sm:$0xff]  ;;  %v288_v46 = vld [vmem:[%s2000_s4 + $0x58] sm:$0xff]  ;;  %v285_v48 = vld [vmem:[%s2000_s4 + $0x40] sm:$0xff] }
   0x9   :  { %v76_v18 = vadd.f32 %v75_v13, %v74_v15  ;;  %1285 = vmatpush1.bf16.msra.mxu1 %v1284_v37  ;;  %v1290_v47 = vpack.c.bf16 %v288_v46, %v286_v45  ;;  %v287_v49 = vld [vmem:[%s2000_s4 + $0x50] sm:$0xff]  ;;  %v290_v51 = vld [vmem:[%s2000_s4 + $0x68] sm:$0xff]  ;;  %v292_v52 = vld [vmem:[%s2000_s4 + $0x78] sm:$0xff]  ;;  %v296_v30 = vshrl.u32 %v295_v29, 7 }
   0xa   :  { %1287 = vmatprep.subr.bf16.mxu1 %v1286_v41  ;;  %v1292_v50 = vpack.c.bf16 %v287_v49, %v285_v48  ;;  %v1294_v53 = vpack.c.bf16 %v292_v52, %v290_v51  ;;  %v289_v54 = vld [vmem:[%s2000_s4 + $0x60] sm:$0xff]  ;;  %v291_v55 = vld [vmem:[%s2000_s4 + $0x70] sm:$0xff]  ;;  %v1600_v60 = vld [vmem:[%s2002_s0 + $0x8] sm:$0xff] }
   0xb   :  { %v78_v20 = vadd.f32 %v77_v16, %v76_v18  ;;  %1281 = vmatpush3.bf16.msra.mxu0 %v1280_v36  ;;  %v1296_v56 = vpack.c.bf16 %v291_v55, %v289_v54  ;;  %v1580_v57 = vld [vmem:[%s2002_s0] sm:$0xff]  ;;  %v1590_v59 = vld [vmem:[%s2001_s6 + $0x14] ss:$8 sps:$4 sm:$0xff]   ;;  %v1605_v61 = vld [vmem:[%s2001_s6 + $0x10] ss:$8 sps:$4 sm:$0xff]   ;;  %v53_v10 = vsel %vm51_vm3, %v1600_v60, 0.0 }
   0xc   :  { %494 = vmatprep.subr.bf16.mxu0 %v1536_v38  ;;  %v1585_v58 = vld [vmem:[%s2001_s6] ss:$8 sps:$4 sm:$0xff]   ;;  %v1610_v62 = vld [vmem:[%s2001_s6 + $0x24] ss:$8 sps:$4 sm:$0xff]   ;;  %v1620_v63 = vld [vmem:[%s2002_s0 + $0x10] sm:$0xff]  ;;  %v52_v9 = vsel %vm51_vm3, %v1580_v57, 0.0 }
   0xd   :  { %v80_v22 = vadd.f32 %v79_v19, %v78_v20  ;;  %1289 = vmatpush1.bf16.msra.mxu1 %v1288_v44  ;;  %v1625_v1 = vld [vmem:[%s2001_s6 + $0x20] ss:$8 sps:$4 sm:$0xff]   ;;  %v1630_v2 = vld [vmem:[%s2001_s6 + $0x34] ss:$8 sps:$4 sm:$0xff]   ;;  %v1645_v4 = vld [vmem:[%s2001_s6 + $0x30] ss:$8 sps:$4 sm:$0xff]   ;;  %v54_v11 = vadd.f32 %v53_v10, %v52_v9 }
   0xe   :  { %1291 = vmatprep.subr.bf16.mxu1 %v1290_v47  ;;  %v1640_v3 = vld [vmem:[%s2002_s0 + $0x18] sm:$0xff]  ;;  %v1655_v5 = vld [vmem:[%s2002_s0 + $0x20] sm:$0xff]  ;;  %v1663_v6 = vld [vmem:[%s2002_s0 + $0x28] sm:$0xff]  ;;  %v55_v12 = vsel %vm51_vm3, %v1620_v63, 0.0  ;;  %v297_v32 = vsub.s32 0, %v296_v30  ;;  %v301_v39 = vsub.s32 1, %v296_v30 }
   0xf   :  { %v82_v23 = vadd.f32 %v81_v21, %v80_v22  ;;  %v1671_v7 = vld [vmem:[%s2002_s0 + $0x30] sm:$0xff]  ;;  %v1679_v8 = vld [vmem:[%s2002_s0 + $0x38] sm:$0xff]  ;;  %v56_v13 = vadd.f32 %v55_v12, %v54_v11  ;;  %v57_v14 = vsel %vm51_vm3, %v1640_v3, 0.0  ;;  %v59_v16 = vsel %vm51_vm3, %v1655_v5, 0.0  ;;  %v293_v31 = vld [vmem:[%s2003_s5] sm:$0x3] }
  0x10   :  { %v61_v18 = vsel %vm51_vm3, %v1663_v6, 0.0  ;;  %v63_v21 = vsel %vm51_vm3, %v1671_v7, 0.0  ;;  %v1723_v33 = vrot.slane %v293_v31, %v297_v32  ;;  %v1727_v40 = vrot.slane %v293_v31, %v301_v39  ;;  %s1416_s5 = smov 64  }
  0x11   :  { %85 = vperm.xlu0 %1315, %v82_v23   ;;  %1293 = vmatpush1.bf16.msra.mxu1 %v1292_v50  ;;  %v58_v15 = vadd.f32 %v57_v14, %v56_v13  ;;  %v65_v23 = vsel %vm51_vm3, %v1679_v8, 0.0 }
  0x12   :  { %1295 = vmatprep.subr.bf16.mxu1 %v1294_v53 }
  0x13   :  { %v60_v17 = vadd.f32 %v59_v16, %v58_v15 }
  0x15   :  { %1297 = vmatpush1.bf16.msra.mxu1 %v1296_v56  ;;  %v62_v20 = vadd.f32 %v61_v18, %v60_v17 }
  0x16   :  { %648 = vmatprep.subr.bf16.mxu1 %v1536_v38 }
  0x17   :  { %v64_v22 = vadd.f32 %v63_v21, %v62_v20 }
  0x18   :  { %1207 = vmatmul.mubr.msk.f32.vlgmr.msra.gmra.mrb[0].mxu1 %vm305_vm2, %v1580_v57 }
  0x19   :  { %400 = vmatprep.mubr.f32.mxu1 %v1415_v28  ;;  %649 = vmatpush1.bf16.msra.mxu1 %v1585_v58  ;;  %v66_v25 = vadd.f32 %v65_v23, %v64_v22 }
  0x1a   :  { %650 = vmatprep.subr.bf16.mxu1 %v1590_v59 }
  0x1c   :  { %1208 = vmatmul.mubr.msk.f32.gmra.mrb[2].mxu1 %vm305_vm2, %v1600_v60 }
  0x1d   :  { %406 = vmatprep.mubr.f32.mxu1 %v1415_v28  ;;  %651 = vmatpush1.bf16.msra.mxu1 %v1605_v61 }
  0x1e   :  { %652 = vmatprep.subr.bf16.mxu1 %v1610_v62 }
  0x20   :  { %1209 = vmatmul.mubr.msk.f32.gmra.mrb[4].mxu1 %vm305_vm2, %v1620_v63 }
  0x21   :  { %412 = vmatprep.mubr.f32.mxu1 %v1415_v28  ;;  %653 = vmatpush1.bf16.msra.mxu1 %v1625_v1 }
  0x22   :  { %654 = vmatprep.subr.bf16.mxu1 %v1630_v2 }
  0x24   :  { %1210 = vmatmul.mubr.msk.f32.gmra.mrb[6].mxu1 %vm305_vm2, %v1640_v3 }
  0x25   :  { %418 = vmatprep.mubr.f32.mxu1 %v1415_v28  ;;  %655 = vmatpush1.bf16.msra.mxu1 %v1645_v4 }
  0x26   :  { %802 = vmatprep.subr.bf16.mxu1 %v1536_v38 }
  0x28   :  { %1211 = vmatmul.mubr.msk.f32.gmra.mrb[8].mxu1 %vm305_vm2, %v1655_v5 }
  0x29   :  { %424 = vmatprep.mubr.f32.mxu1 %v1415_v28 }
  0x2c   :  { %1212 = vmatmul.mubr.msk.f32.gmra.mrb[10].mxu1 %vm305_vm2, %v1663_v6 }
  0x2d   :  { %430 = vmatprep.mubr.f32.mxu1 %v1415_v28 }
  0x30   :  { %1213 = vmatmul.mubr.msk.f32.gmra.mrb[12].mxu1 %vm305_vm2, %v1671_v7 }
  0x31   :  { %436 = vmatprep.mubr.f32.mxu1 %v1415_v28 }
  0x34   :  { %1214 = vmatmul.mubr.msk.f32.gmra.mrb[14].mxu1 %vm305_vm2, %v1679_v8 }
  0x35   :  { %680 = vmatprep.mubr.bf16.mxu1 %v1412_v0 }
  0x90   :  { %v86_v19 = vpop.permute.xlu0 %85 }
  0x91   :  { %1328 = vrcp.f32 %v86_v19 }
  0x9b   :  { %v1329_v26 = vpop.eup %1328 }
  0x9c   :  { %v89_v27 = vmul.f32 %v1329_v26, %v66_v25 }
  0x9e   :  { %1255 = vmatmul.mubr.msk.f32.vlgmr.msra.gmra.mrb[0].mxu0 %vm51_vm3, %v89_v27 }
  0x9f   :  { %495 = vmatpush1.bf16.msra.mxu0 %v1585_v58  ;;  %526 = vmatprep.mubr.bf16.mxu0 %v1412_v0 }
  0xa0   :  { %496 = vmatprep.subr.bf16.mxu0 %v1590_v59 }
  0xa3   :  { %497 = vmatpush1.bf16.msra.mxu0 %v1605_v61 }
  0xa4   :  { %498 = vmatprep.subr.bf16.mxu0 %v1610_v62 }
  0xa7   :  { %499 = vmatpush1.bf16.msra.mxu0 %v1625_v1 }
  0xa8   :  { %500 = vmatprep.subr.bf16.mxu0 %v1630_v2 }
  0xab   :  { %501 = vmatpush1.bf16.msra.mxu0 %v1645_v4 }
  0xac   :  { %571 = vmatprep.subr.bf16.mxu0 %v1536_v38 }
  0xae   :  { %527 = vmatmul.mubr.bf16.vlgmr.msra.gmra.mrb[4].mxu0 %v1412_v0 }
  0xaf   :  { %572 = vmatpush1.bf16.msra.mxu0 %v1585_v58  ;;  %603 = vmatprep.mubr.bf16.mxu0 %v1412_v0 }
  0xb0   :  { %573 = vmatprep.subr.bf16.mxu0 %v1590_v59 }
  0xb3   :  { %574 = vmatpush1.bf16.msra.mxu0 %v1605_v61 }
  0xb4   :  { %575 = vmatprep.subr.bf16.mxu0 %v1610_v62 }
  0xb7   :  { %576 = vmatpush1.bf16.msra.mxu0 %v1625_v1 }
  0xb8   :  { %577 = vmatprep.subr.bf16.mxu0 %v1630_v2 }
  0xbb   :  { %578 = vmatpush1.bf16.msra.mxu0 %v1645_v4 }
  0xbc   :  { %725 = vmatprep.subr.bf16.mxu0 %v1536_v38 }
  0xeb   :  { %v396_v34 = vpop.f32.mrb[0].mxu1 }
  0xec   :  { %v398_v35 = vpop.f32.mrb[1].mxu1  ;;  %v397_v41 = vadd.f32 %v396_v34, %v1723_v33 }
  0xed   :  { %v399_v42 = vadd.f32 %v398_v35, %v1727_v40 }
  0xef   :  { %v402_v11 = vpop.f32.mrb[2].mxu1 }
  0xf0   :  { %v404_v12 = vpop.f32.mrb[3].mxu1  ;;  %v403_v21 = vadd.f32 %v402_v11, %v1723_v33 }
  0xf1   :  { %v405_v22 = vadd.f32 %v404_v12, %v1727_v40 }
 0x171   :  { %v1725_v36 = vpop.f32.mrb[0].mxu0 }
 0x172   :  { %v1256_v37 = vpop.f32.mrb[1].mxu0 }
 0x181   :  { %v528_v43 = vpop.f32.mrb[4].mxu0 }
 0x182   :  { %v535_v44 = vadd.f32 %v528_v43, %v397_v41  ;;  %v530_v45 = vpop.f32.mrb[5].mxu0 }
 0x183   :  { %v536_v46 = vadd.f32 %v530_v45, %v399_v42  ;;  %v532_v47 = vpop.f32.mrb[6].mxu0  ;;  %v408_v45 = vpop.f32.mrb[4].mxu1 }
 0x184   :  { %v533_v48 = vpop.f32.mrb[7].mxu0  ;;  %v537_v50 = vmul.f32 0.5, %v535_v44 }
 0x185   :  { %1330 = vtanh.f32 %v536_v46  ;;  %v538_v14 = vmul.f32 0.5, %v536_v46  ;;  %v410_v46 = vpop.f32.mrb[5].mxu1 }
 0x186   :  { %1332 = vtanh.f32 %v537_v50  ;;  %v1752_v47 = vpop.f32.mrb[6].mxu1 }
 0x187   :  { %v1754_v48 = vpop.f32.mrb[7].mxu1 }
 0x18f   :  { %v1331_v49 = vpop.eup %1330 }
 0x190   :  { %548 = vrot.lane.b32.xlu0 %v1331_v49, %s1416_s5  ;;  %v1333_v51 = vpop.eup %1332  ;;  %v1756_v49 = vpop.f32.mrb[8].mxu1 }
 0x191   :  { %v541_v52 = vmul.f32 0.5, %v1333_v51  ;;  %v1758_v50 = vpop.f32.mrb[9].mxu1 }
 0x192   :  { %v1760_v51 = vpop.f32.mrb[10].mxu1 }
 0x193   :  { %v543_v53 = vadd.f32 0.5, %v541_v52  ;;  %v1762_v52 = vpop.f32.mrb[11].mxu1 }
 0x195   :  { %v546_v56 = vmul.f32 0.0, %v543_v53 }
 0x202   :  { %v549_v54 = vpop.permute.xlu0 %548 }
 0x203   :  { %v551_v55 = vmul.f32 %v549_v54, %v543_v53  ;;  %v1764_v54 = vpop.f32.mrb[12].mxu1 }
 0x205   :  { %553 = vrot.lane.b32.xlu1 %v551_v55, %s1416_s5  ;;  %v1767_v55 = vpop.f32.mrb[13].mxu1 }
 0x277   :  { %v554_v9 = vpop.permute.xlu1 %553 }
 0x278   :  { %v556_v10 = vadd.f32 %v554_v9, %v546_v56  ;;  %v1769_v56 = vpop.f32.mrb[14].mxu1 }
 0x279   :  { %v1771_v9 = vpop.f32.mrb[15].mxu1 }
 0x27a   :  { %1334 = vtanh.f32 %v556_v10 }
 0x27b   :  { %1336 = vtanh.f32 %v538_v14 }
 0x284   :  { %v1335_v13 = vpop.eup %1334 }
 0x285   :  { %559 = vrot.lane.b32.xlu1 %v1335_v13, %s1416_s5  ;;  %v1337_v15 = vpop.eup %1336 }
 0x286   :  { %v542_v16 = vmul.f32 0.5, %v1337_v15 }
 0x288   :  { %v544_v17 = vadd.f32 0.5, %v542_v16 }
 0x2f7   :  { %v560_v18 = vpop.permute.xlu1 %559 }
 0x2f8   :  { %v1734_v19 = vmul.f32 %v560_v18, %v544_v17  ;;  %v409_v17 = vadd.f32 %v408_v45, %v1723_v33  ;;  %v411_v18 = vadd.f32 %v410_v46, %v1727_v40 }
 0x2fa   :  { %v567_v20 = vpack.c.bf16 %v1734_v19, %v1734_v19 }
 0x2fc   :  { %1223 = vmatmul.mubr.msk.bf16.vlgmr.msra.gmra.mrb[8].mxu0 %vm305_vm2, %v567_v20 }
 0x2fd   :  { %726 = vmatpush1.bf16.msra.mxu0 %v1585_v58  ;;  %757 = vmatprep.mubr.bf16.mxu0 %v1412_v0 }
 0x2fe   :  { %727 = vmatprep.subr.bf16.mxu0 %v1590_v59 }
 0x301   :  { %728 = vmatpush1.bf16.msra.mxu0 %v1605_v61 }
 0x302   :  { %729 = vmatprep.subr.bf16.mxu0 %v1610_v62 }
 0x305   :  { %730 = vmatpush1.bf16.msra.mxu0 %v1625_v1 }
 0x306   :  { %731 = vmatprep.subr.bf16.mxu0 %v1630_v2 }
 0x309   :  { %732 = vmatpush1.bf16.msra.mxu0 %v1645_v4 }
 0x30a   :  { %879 = vmatprep.subr.bf16.mxu0 %v1536_v38 }
 0x3cf   :  { %v605_v23 = vpop.f32.mrb[8].mxu0 }
 0x3d0   :  { %v612_v25 = vadd.f32 %v605_v23, %v403_v21  ;;  %v607_v26 = vpop.f32.mrb[9].mxu0 }
 0x3d1   :  { %v613_v27 = vadd.f32 %v607_v26, %v405_v22  ;;  %v609_v29 = vpop.f32.mrb[10].mxu0 }
 0x3d2   :  { %v610_v30 = vpop.f32.mrb[11].mxu0  ;;  %v614_v32 = vmul.f32 0.5, %v612_v25 }
 0x3d3   :  { %1338 = vtanh.f32 %v613_v27 }
 0x3d4   :  { %1340 = vtanh.f32 %v614_v32 }
 0x3dd   :  { %v1339_v31 = vpop.eup %1338 }
 0x3de   :  { %625 = vrot.lane.b32.xlu0 %v1339_v31, %s1416_s5  ;;  %v1341_v34 = vpop.eup %1340 }
 0x3df   :  { %v618_v35 = vmul.f32 0.5, %v1341_v34 }
 0x3e1   :  { %v620_v37 = vadd.f32 0.5, %v618_v35 }
 0x3e3   :  { %v623_v42 = vmul.f32 %v620_v37, %v556_v10  ;;  %v615_v10 = vmul.f32 0.5, %v613_v27 }
 0x450   :  { %v626_v39 = vpop.permute.xlu0 %625 }
 0x451   :  { %v628_v41 = vmul.f32 %v626_v39, %v620_v37 }
 0x453   :  { %630 = vrot.lane.b32.xlu1 %v628_v41, %s1416_s5 }
 0x4c5   :  { %v631_v43 = vpop.permute.xlu1 %630 }
 0x4c6   :  { %v633_v44 = vadd.f32 %v631_v43, %v623_v42 }
 0x4c8   :  { %1342 = vtanh.f32 %v633_v44 }
 0x4c9   :  { %1344 = vtanh.f32 %v615_v10 }
 0x4d2   :  { %v1343_v53 = vpop.eup %1342 }
 0x4d3   :  { %636 = vrot.lane.b32.xlu0 %v1343_v53, %s1416_s5  ;;  %v1345_v11 = vpop.eup %1344 }
 0x4d4   :  { %v619_v12 = vmul.f32 0.5, %v1345_v11 }
 0x4d6   :  { %v621_v13 = vadd.f32 0.5, %v619_v12 }
 0x545   :  { %v637_v14 = vpop.permute.xlu0 %636 }
 0x546   :  { %v1773_v15 = vmul.f32 %v637_v14, %v621_v13  ;;  %v417_v13 = vadd.f32 %v1754_v48, %v1727_v40 }
 0x548   :  { %v644_v16 = vpack.c.bf16 %v1773_v15, %v1773_v15 }
 0x54a   :  { %1224 = vmatmul.mubr.msk.bf16.vlgmr.msra.gmra.mrb[16].mxu1 %vm305_vm2, %v644_v16 }
 0x54b   :  { %803 = vmatpush1.bf16.msra.mxu1 %v1585_v58  ;;  %834 = vmatprep.mubr.bf16.mxu1 %v1412_v0 }
 0x54c   :  { %804 = vmatprep.subr.bf16.mxu1 %v1590_v59 }
 0x54f   :  { %805 = vmatpush1.bf16.msra.mxu1 %v1605_v61 }
 0x550   :  { %806 = vmatprep.subr.bf16.mxu1 %v1610_v62 }
 0x553   :  { %807 = vmatpush1.bf16.msra.mxu1 %v1625_v1 }
 0x554   :  { %808 = vmatprep.subr.bf16.mxu1 %v1630_v2 }
 0x557   :  { %809 = vmatpush1.bf16.msra.mxu1 %v1645_v4 }
 0x558   :  { %956 = vmatprep.subr.bf16.mxu1 %v1536_v38 }
 0x61d   :  { %v682_v20 = vpop.f32.mrb[16].mxu1 }
 0x61e   :  { %v689_v21 = vadd.f32 %v682_v20, %v409_v17  ;;  %v684_v22 = vpop.f32.mrb[17].mxu1 }
 0x61f   :  { %v690_v23 = vadd.f32 %v684_v22, %v411_v18  ;;  %v686_v25 = vpop.f32.mrb[18].mxu1 }
 0x620   :  { %v687_v26 = vpop.f32.mrb[19].mxu1  ;;  %v691_v29 = vmul.f32 0.5, %v689_v21 }
 0x621   :  { %1346 = vtanh.f32 %v690_v23  ;;  %v692_v43 = vmul.f32 0.5, %v690_v23 }
 0x622   :  { %1348 = vtanh.f32 %v691_v29 }
 0x62b   :  { %v1347_v27 = vpop.eup %1346 }
 0x62c   :  { %702 = vrot.lane.b32.xlu1 %v1347_v27, %s1416_s5  ;;  %v1349_v30 = vpop.eup %1348 }
 0x62d   :  { %v695_v31 = vmul.f32 0.5, %v1349_v30 }
 0x62f   :  { %v697_v32 = vadd.f32 0.5, %v695_v31 }
 0x631   :  { %v700_v37 = vmul.f32 %v697_v32, %v633_v44  ;;  %v415_v44 = vadd.f32 %v1752_v47, %v1723_v33 }
 0x69e   :  { %v703_v34 = vpop.permute.xlu1 %702 }
 0x69f   :  { %v705_v35 = vmul.f32 %v703_v34, %v697_v32 }
 0x6a1   :  { %707 = vrot.lane.b32.xlu0 %v705_v35, %s1416_s5 }
 0x713   :  { %v708_v39 = vpop.permute.xlu0 %707 }
 0x714   :  { %v710_v41 = vadd.f32 %v708_v39, %v700_v37 }
 0x716   :  { %1350 = vtanh.f32 %v710_v41 }
 0x717   :  { %1352 = vtanh.f32 %v692_v43 }
 0x720   :  { %v1351_v42 = vpop.eup %1350 }
 0x721   :  { %713 = vrot.lane.b32.xlu1 %v1351_v42, %s1416_s5  ;;  %v1353_v45 = vpop.eup %1352 }
 0x722   :  { %v696_v46 = vmul.f32 0.5, %v1353_v45  ;;  %v423_v45 = vadd.f32 %v1758_v50, %v1727_v40 }
 0x724   :  { %v698_v53 = vadd.f32 0.5, %v696_v46 }
 0x793   :  { %v714_v10 = vpop.permute.xlu1 %713 }
 0x794   :  { %v1792_v11 = vmul.f32 %v714_v10, %v698_v53 }
 0x796   :  { %v721_v12 = vpack.c.bf16 %v1792_v11, %v1792_v11 }
 0x798   :  { %1225 = vmatmul.mubr.msk.bf16.vlgmr.msra.gmra.mrb[12].mxu0 %vm305_vm2, %v721_v12 }
 0x799   :  { %880 = vmatpush1.bf16.msra.mxu0 %v1585_v58  ;;  %911 = vmatprep.mubr.bf16.mxu0 %v1412_v0 }
 0x79a   :  { %881 = vmatprep.subr.bf16.mxu0 %v1590_v59 }
 0x79d   :  { %882 = vmatpush1.bf16.msra.mxu0 %v1605_v61 }
 0x79e   :  { %883 = vmatprep.subr.bf16.mxu0 %v1610_v62 }
 0x7a1   :  { %884 = vmatpush1.bf16.msra.mxu0 %v1625_v1 }
 0x7a2   :  { %885 = vmatprep.subr.bf16.mxu0 %v1630_v2 }
 0x7a5   :  { %886 = vmatpush1.bf16.msra.mxu0 %v1645_v4 }
 0x7a6   :  { %1033 = vmatprep.subr.bf16.mxu0 %v1536_v38 }
 0x86b   :  { %v759_v14 = vpop.f32.mrb[12].mxu0 }
 0x86c   :  { %v766_v16 = vadd.f32 %v759_v14, %v415_v44  ;;  %v761_v17 = vpop.f32.mrb[13].mxu0 }
 0x86d   :  { %v767_v18 = vadd.f32 %v761_v17, %v417_v13  ;;  %v763_v20 = vpop.f32.mrb[14].mxu0 }
 0x86e   :  { %v764_v21 = vpop.f32.mrb[15].mxu0  ;;  %v768_v23 = vmul.f32 0.5, %v766_v16 }
 0x86f   :  { %1354 = vtanh.f32 %v767_v18  ;;  %v769_v32 = vmul.f32 0.5, %v767_v18 }
 0x870   :  { %1356 = vtanh.f32 %v768_v23 }
 0x879   :  { %v1355_v22 = vpop.eup %1354 }
 0x87a   :  { %779 = vrot.lane.b32.xlu0 %v1355_v22, %s1416_s5  ;;  %v1357_v25 = vpop.eup %1356 }
 0x87b   :  { %v772_v38 = vmul.f32 0.5, %v1357_v25 }
 0x87d   :  { %v774_v26 = vadd.f32 0.5, %v772_v38 }
 0x87f   :  { %v777_v48 = vmul.f32 %v774_v26, %v710_v41  ;;  %v421_v41 = vadd.f32 %v1756_v49, %v1723_v33 }
 0x8ec   :  { %v780_v27 = vpop.permute.xlu0 %779 }
 0x8ed   :  { %v782_v47 = vmul.f32 %v780_v27, %v774_v26 }
 0x8ef   :  { %784 = vrot.lane.b32.xlu1 %v782_v47, %s1416_s5 }
 0x961   :  { %v785_v29 = vpop.permute.xlu1 %784 }
 0x962   :  { %v787_v30 = vadd.f32 %v785_v29, %v777_v48 }
 0x964   :  { %1358 = vtanh.f32 %v787_v30 }
 0x965   :  { %1360 = vtanh.f32 %v769_v32 }
 0x96e   :  { %v1359_v31 = vpop.eup %1358 }
 0x96f   :  { %790 = vrot.lane.b32.xlu0 %v1359_v31, %s1416_s5  ;;  %v1361_v34 = vpop.eup %1360 }
 0x970   :  { %v773_v35 = vmul.f32 0.5, %v1361_v34 }
 0x972   :  { %v775_v37 = vadd.f32 0.5, %v773_v35 }
 0x9e1   :  { %v791_v39 = vpop.permute.xlu0 %790 }
 0x9e2   :  { %v1813_v42 = vmul.f32 %v791_v39, %v775_v37 }
 0x9e4   :  { %v798_v43 = vpack.c.bf16 %v1813_v42, %v1813_v42 }
 0x9e6   :  { %1226 = vmatmul.mubr.msk.bf16.vlgmr.msra.gmra.mrb[20].mxu1 %vm305_vm2, %v798_v43 }
 0x9e7   :  { %957 = vmatpush1.bf16.msra.mxu1 %v1585_v58  ;;  %988 = vmatprep.mubr.bf16.mxu1 %v1412_v0 }
 0x9e8   :  { %958 = vmatprep.subr.bf16.mxu1 %v1590_v59 }
 0x9eb   :  { %959 = vmatpush1.bf16.msra.mxu1 %v1605_v61 }
 0x9ec   :  { %960 = vmatprep.subr.bf16.mxu1 %v1610_v62 }
 0x9ef   :  { %961 = vmatpush1.bf16.msra.mxu1 %v1625_v1 }
 0x9f0   :  { %962 = vmatprep.subr.bf16.mxu1 %v1630_v2 }
 0x9f3   :  { %963 = vmatpush1.bf16.msra.mxu1 %v1645_v4 }
 0x9f4   :  { %1298 = vmatprep.subr.bf16.mxu1 %v1413_v24 }
 0xab9   :  { %v836_v46 = vpop.f32.mrb[20].mxu1 }
 0xaba   :  { %v843_v53 = vadd.f32 %v836_v46, %v421_v41  ;;  %v838_v10 = vpop.f32.mrb[21].mxu1 }
 0xabb   :  { %v844_v12 = vadd.f32 %v838_v10, %v423_v45  ;;  %v840_v44 = vpop.f32.mrb[22].mxu1 }
 0xabc   :  { %v841_v13 = vpop.f32.mrb[23].mxu1  ;;  %v845_v16 = vmul.f32 0.5, %v843_v53 }
 0xabd   :  { %1362 = vtanh.f32 %v844_v12  ;;  %v846_v38 = vmul.f32 0.5, %v844_v12 }
 0xabe   :  { %1364 = vtanh.f32 %v845_v16  ;;  %v433_v16 = vadd.f32 %v1764_v54, %v1723_v33 }
 0xac7   :  { %v1363_v14 = vpop.eup %1362 }
 0xac8   :  { %856 = vrot.lane.b32.xlu1 %v1363_v14, %s1416_s5  ;;  %v1365_v17 = vpop.eup %1364 }
 0xac9   :  { %v849_v18 = vmul.f32 0.5, %v1365_v17  ;;  %v435_v17 = vadd.f32 %v1767_v55, %v1727_v40  ;;  %v1205_v55 = vld [vmem:[%s2004_s3] ss:$0 sm:$0xff] }
 0xacb   :  { %v851_v20 = vadd.f32 0.5, %v849_v18 }
 0xacd   :  { %v854_v50 = vmul.f32 %v851_v20, %v787_v30  ;;  %v427_v30 = vadd.f32 %v1760_v51, %v1723_v33 }
 0xb3a   :  { %v857_v21 = vpop.permute.xlu1 %856 }
 0xb3b   :  { %v859_v49 = vmul.f32 %v857_v21, %v851_v20 }
 0xb3d   :  { %861 = vrot.lane.b32.xlu0 %v859_v49, %s1416_s5 }
 0xbaf   :  { %v862_v22 = vpop.permute.xlu0 %861 }
 0xbb0   :  { %v864_v23 = vadd.f32 %v862_v22, %v854_v50 }
 0xbb2   :  { %1366 = vtanh.f32 %v864_v23 }
 0xbb3   :  { %1368 = vtanh.f32 %v846_v38 }
 0xbbc   :  { %v1367_v25 = vpop.eup %1366 }
 0xbbd   :  { %867 = vrot.lane.b32.xlu1 %v1367_v25, %s1416_s5  ;;  %v1369_v26 = vpop.eup %1368 }
 0xbbe   :  { %v850_v27 = vmul.f32 0.5, %v1369_v26 }
 0xbc0   :  { %v852_v47 = vadd.f32 0.5, %v850_v27 }
 0xc2f   :  { %v868_v48 = vpop.permute.xlu1 %867 }
 0xc30   :  { %v1834_v29 = vmul.f32 %v868_v48, %v852_v47  ;;  %v171_v47 = vadd.f32 %v1205_v55, %v1725_v36 }
 0xc32   :  { %v875_v31 = vpack.c.bf16 %v1834_v29, %v1834_v29  ;;  %v175_v48 = vmul.f32 %v171_v47, %v1600_v60  ;;  %v177_v36 = vmul.f32 %v171_v47, %v1640_v3 }
 0xc34   :  { %1227 = vmatmul.mubr.msk.bf16.vlgmr.msra.gmra.mrb[16].mxu0 %vm305_vm2, %v875_v31  ;;  %v185_v31 = vsel %vm51_vm3, %v175_v48, 0.0  ;;  %v191_v60 = vsel %vm51_vm3, %v177_v36, 0.0 }
 0xc35   :  { %1034 = vmatpush1.bf16.msra.mxu0 %v1585_v58  ;;  %1065 = vmatprep.mubr.bf16.mxu0 %v1412_v0  ;;  %v429_v58 = vadd.f32 %v1762_v52, %v1727_v40 }
 0xc36   :  { %1035 = vmatprep.subr.bf16.mxu0 %v1590_v59 }
 0xc39   :  { %1036 = vmatpush1.bf16.msra.mxu0 %v1605_v61 }
 0xc3a   :  { %1037 = vmatprep.subr.bf16.mxu0 %v1610_v62 }
 0xc3d   :  { %1038 = vmatpush1.bf16.msra.mxu0 %v1625_v1 }
 0xc3e   :  { %1039 = vmatprep.subr.bf16.mxu0 %v1630_v2 }
 0xc41   :  { %1040 = vmatpush1.bf16.msra.mxu0 %v1645_v4 }
 0xd07   :  { %v913_v32 = vpop.f32.mrb[16].mxu0 }
 0xd08   :  { %v920_v0 = vadd.f32 %v913_v32, %v427_v30  ;;  %v915_v34 = vpop.f32.mrb[17].mxu0 }
 0xd09   :  { %v921_v59 = vadd.f32 %v915_v34, %v429_v58  ;;  %v917_v35 = vpop.f32.mrb[18].mxu0  ;;  %v174_v34 = vmul.f32 %v171_v47, %v1580_v57 }
 0xd0a   :  { %v918_v61 = vpop.f32.mrb[19].mxu0  ;;  %v922_v1 = vmul.f32 0.5, %v920_v0  ;;  %v179_v35 = vmul.f32 %v171_v47, %v1663_v6 }
 0xd0b   :  { %1370 = vtanh.f32 %v921_v59  ;;  %v923_v46 = vmul.f32 0.5, %v921_v59  ;;  %v182_v59 = vsel %vm51_vm3, %v174_v34, 0.0 }
 0xd0c   :  { %1372 = vtanh.f32 %v922_v1  ;;  %v197_v61 = vsel %vm51_vm3, %v179_v35, 0.0 }
 0xd15   :  { %v1371_v62 = vpop.eup %1370 }
 0xd16   :  { %933 = vrot.lane.b32.xlu0 %v1371_v62, %s1416_s5  ;;  %v1373_v2 = vpop.eup %1372  ;;  %v181_v62 = vmul.f32 %v171_v47, %v1679_v8  ;;  %v439_v8 = vadd.f32 %v1769_v56, %v1723_v33  ;;  %v178_v33 = vmul.f32 %v171_v47, %v1655_v5  ;;  %v180_v56 = vmul.f32 %v171_v47, %v1671_v7  ;;  %v1107_v5 = vld [vmem:[%s2005_s7] sm:$0xff]  ;;  %v1108_v7 = vld [vmem:[%s2005_s7 + $0x8] sm:$0xff] }
 0xd17   :  { %v926_v4 = vmul.f32 0.5, %v1373_v2 }
 0xd18   :  { %v203_v1 = vsel %vm51_vm3, %v181_v62, 0.0 }
 0xd19   :  { %v928_v37 = vadd.f32 0.5, %v926_v4 }
 0xd1b   :  { %v931_v52 = vmul.f32 %v928_v37, %v864_v23 }
 0xd88   :  { %v934_v39 = vpop.permute.xlu0 %933 }
 0xd89   :  { %v936_v51 = vmul.f32 %v934_v39, %v928_v37 }
 0xd8b   :  { %938 = vrot.lane.b32.xlu1 %v936_v51, %s1416_s5  ;;  %v441_v51 = vadd.f32 %v1771_v9, %v1727_v40  ;;  %v194_v40 = vsel %vm51_vm3, %v178_v33, 0.0  ;;  %v200_v9 = vsel %vm51_vm3, %v180_v56, 0.0 }
 0xdfd   :  { %v939_v43 = vpop.permute.xlu1 %938 }
 0xdfe   :  { %v941_v41 = vadd.f32 %v939_v43, %v931_v52 }
 0xe00   :  { %1374 = vtanh.f32 %v941_v41 }
 0xe01   :  { %1376 = vtanh.f32 %v923_v46 }
 0xe0a   :  { %v1375_v45 = vpop.eup %1374 }
 0xe0b   :  { %944 = vrot.lane.b32.xlu0 %v1375_v45, %s1416_s5  ;;  %v1377_v53 = vpop.eup %1376 }
 0xe0c   :  { %v927_v10 = vmul.f32 0.5, %v1377_v53 }
 0xe0e   :  { %v929_v12 = vadd.f32 0.5, %v927_v10 }
 0xe7d   :  { %v945_v44 = vpop.permute.xlu0 %944 }
 0xe7e   :  { %v1854_v13 = vmul.f32 %v945_v44, %v929_v12  ;;  %v176_v12 = vmul.f32 %v171_v47, %v1620_v63 }
 0xe80   :  { %v952_v14 = vpack.c.bf16 %v1854_v13, %v1854_v13  ;;  %v188_v44 = vsel %vm51_vm3, %v176_v12, 0.0 }
 0xe82   :  { %1228 = vmatmul.mubr.msk.bf16.vlgmr.msra.gmra.mrb[24].mxu1 %vm305_vm2, %v952_v14 }
 0xe83   :  { %1273 = vmatprep.mubr.msk.f32.mxu1 %vm1414_vm1, %v1415_v28 }
 0xf55   :  { %v990_v18 = vpop.f32.mrb[24].mxu1 }
 0xf56   :  { %v997_v20 = vadd.f32 %v990_v18, %v433_v16  ;;  %v992_v21 = vpop.f32.mrb[25].mxu1 }
 0xf57   :  { %v998_v49 = vadd.f32 %v992_v21, %v435_v17  ;;  %v994_v50 = vpop.f32.mrb[26].mxu1 }
 0xf58   :  { %v995_v22 = vpop.f32.mrb[27].mxu1  ;;  %v999_v25 = vmul.f32 0.5, %v997_v20  ;;  %v1299_v50 = vpack.c.bf16 %v1108_v7, %v1107_v5 }
 0xf59   :  { %1378 = vtanh.f32 %v998_v49  ;;  %v1000_v2 = vmul.f32 0.5, %v998_v49  ;;  %v1109_v49 = vld [vmem:[%s2005_s7 + $0x10] sm:$0xff]  ;;  %v1110_v22 = vld [vmem:[%s2005_s7 + $0x18] sm:$0xff] }
 0xf5a   :  { %1380 = vtanh.f32 %v999_v25  ;;  %1300 = vmatpush3.bf16.msra.mxu1 %v1299_v50 }
 0xf5b   :  { %1301 = vmatprep.subr.bf16.mxu1 %v1413_v24 }
 0xf63   :  { %v1379_v23 = vpop.eup %1378 }
 0xf64   :  { %1010 = vrot.lane.b32.xlu1 %v1379_v23, %s1416_s5  ;;  %v1381_v38 = vpop.eup %1380  ;;  %v1302_v23 = vpack.c.bf16 %v1110_v22, %v1109_v49 }
 0xf65   :  { %v1003_v28 = vmul.f32 0.5, %v1381_v38 }
 0xf66   :  { %1303 = vmatpush3.bf16.msra.mxu1 %v1302_v23 }
 0xf67   :  { %v1005_v26 = vadd.f32 0.5, %v1003_v28  ;;  %1304 = vmatprep.subr.bf16.mxu1 %v1413_v24 }
 0xf69   :  { %v1008_v30 = vmul.f32 %v1005_v26, %v941_v41 }
 0xfd6   :  { %v1011_v27 = vpop.permute.xlu1 %1010 }
 0xfd7   :  { %v1013_v54 = vmul.f32 %v1011_v27, %v1005_v26 }
 0xfd9   :  { %1015 = vrot.lane.b32.xlu0 %v1013_v54, %s1416_s5 }
 0xff8   :  { %186 = vadd.xlane.f32.xlu0 %v185_v31 }
0x104b   :  { %v1016_v58 = vpop.permute.xlu0 %1015 }
0x104c   :  { %v1873_v32 = vadd.f32 %v1016_v58, %v1008_v30 }
0x104e   :  { %1382 = vtanh.f32 %v1873_v32 }
0x104f   :  { %1384 = vtanh.f32 %v1000_v2 }
0x1058   :  { %v1383_v0 = vpop.eup %1382 }
0x1059   :  { %1021 = vrot.lane.b32.xlu1 %v1383_v0, %s1416_s5  ;;  %v1385_v57 = vpop.eup %1384 }
0x105a   :  { %v1004_v4 = vmul.f32 0.5, %v1385_v57 }
0x105c   :  { %v1006_v37 = vadd.f32 0.5, %v1004_v4 }
0x107d   :  { %183 = vadd.xlane.f32.xlu1 %v182_v59 }
0x1081   :  { %192 = vadd.xlane.f32.xlu1 %v191_v60 }
0x1085   :  { %198 = vadd.xlane.f32.xlu1 %v197_v61  ;;  %v187_v18 = vpop.xlane.xlu0 %186 }
0x1086   :  { %vm207_vm8 = vcmp.eq.f32.partialorder %v187_v18, 0.0 }
0x1087   :  { %v215_v0 = vsel %vm207_vm8, -inf, %v187_v18 }
0x1089   :  { %204 = vadd.xlane.f32.xlu1 %v203_v1 }
0x10cb   :  { %v1022_v3 = vpop.permute.xlu1 %1021 }
0x10cc   :  { %v1885_v39 = vmul.f32 %v1022_v3, %v1006_v37 }
0x10ce   :  { %v1029_v6 = vpack.c.bf16 %v1885_v39, %v1885_v39 }
0x10d0   :  { %1229 = vmatmul.mubr.msk.bf16.vlgmr.msra.gmra.mrb[20].mxu0 %vm305_vm2, %v1029_v6 }
0x110a   :  { %v184_v25 = vpop.xlane.xlu1 %183 }
0x110b   :  { %vm206_vm4 = vcmp.eq.f32.partialorder %v184_v25, 0.0 }
0x110c   :  { %v214_v47 = vsel %vm206_vm4, -inf, %v184_v25 }
0x110e   :  { %v193_v38 = vpop.xlane.xlu1 %192 }
0x110f   :  { %vm209_vm9 = vcmp.eq.f32.partialorder %v193_v38, 0.0 }
0x1110   :  { %v217_v34 = vsel %vm209_vm9, -inf, %v193_v38 }
0x1112   :  { %v199_v28 = vpop.xlane.xlu1 %198 }
0x1113   :  { %vm211_vm5 = vcmp.eq.f32.partialorder %v199_v28, 0.0 }
0x1114   :  { %v219_v48 = vsel %vm211_vm5, -inf, %v199_v28 }
0x1115   :  { %v223_v60 = vmax.f32 %v215_v0, %v219_v48 }
0x1116   :  { %v205_v27 = vpop.xlane.xlu1 %204 }
0x1117   :  { %vm213_vm6 = vcmp.eq.f32.partialorder %v205_v27, 0.0 }
0x1118   :  { %v221_v31 = vsel %vm213_vm6, -inf, %v205_v27 }
0x1119   :  { %v225_v35 = vmax.f32 %v217_v34, %v221_v31 }
0x11a3   :  { %v1067_v52 = vpop.f32.mrb[20].mxu0 }
0x11a4   :  { %v1074_v43 = vadd.f32 %v1067_v52, %v439_v8  ;;  %v1069_v41 = vpop.f32.mrb[21].mxu0 }
0x11a5   :  { %v1894_v45 = vadd.f32 %v1069_v41, %v441_v51  ;;  %v1071_v46 = vpop.f32.mrb[22].mxu0 }
0x11a6   :  { %v1072_v53 = vpop.f32.mrb[23].mxu0  ;;  %v1076_v14 = vmul.f32 0.5, %v1074_v43 }
0x11a7   :  { %1386 = vtanh.f32 %v1894_v45 }
0x11a8   :  { %1388 = vtanh.f32 %v1076_v14 }
0x11b1   :  { %v1387_v10 = vpop.eup %1386 }
0x11b2   :  { %1087 = vrot.lane.b32.xlu0 %v1387_v10, %s1416_s5  ;;  %v1389_v16 = vpop.eup %1388 }
0x11b3   :  { %v1080_v17 = vmul.f32 0.5, %v1389_v16 }
0x11b5   :  { %v1904_v20 = vadd.f32 0.5, %v1080_v17 }
0x11b7   :  { %v1085_v38 = vmul.f32 %v1904_v20, %v1873_v32 }
0x11d1   :  { %189 = vadd.xlane.f32.xlu0 %v188_v44 }
0x11d5   :  { %195 = vadd.xlane.f32.xlu0 %v194_v40 }
0x11d9   :  { %201 = vadd.xlane.f32.xlu0 %v200_v9 }
0x1224   :  { %v1088_v63 = vpop.permute.xlu0 %1087 }
0x1225   :  { %v1090_v21 = vmul.f32 %v1088_v63, %v1904_v20 }
0x1227   :  { %1092 = vrot.lane.b32.xlu0 %v1090_v21, %s1416_s5 }
0x125e   :  { %v190_v26 = vpop.xlane.xlu0 %189 }
0x125f   :  { %vm208_vm10 = vcmp.eq.f32.partialorder %v190_v26, 0.0 }
0x1260   :  { %v216_v59 = vsel %vm208_vm10, -inf, %v190_v26 }
0x1262   :  { %v196_v54 = vpop.xlane.xlu0 %195 }
0x1263   :  { %vm210_vm7 = vcmp.eq.f32.partialorder %v196_v54, 0.0 }
0x1264   :  { %v218_v55 = vsel %vm210_vm7, -inf, %v196_v54 }
0x1265   :  { %v222_v58 = vmax.f32 %v214_v47, %v218_v55 }
0x1266   :  { %v202_v30 = vpop.xlane.xlu0 %201 }
0x1267   :  { %vm212_vm11 = vcmp.eq.f32.partialorder %v202_v30, 0.0  ;;  %v226_v62 = vmax.f32 %v222_v58, %v223_v60 }
0x1268   :  { %v220_v36 = vsel %vm212_vm11, -inf, %v202_v30 }
0x1269   :  { %v224_v61 = vmax.f32 %v216_v59, %v220_v36 }
0x126b   :  { %v227_v1 = vmax.f32 %v224_v61, %v225_v35 }
0x126d   :  { %v228_v2 = vmax.f32 %v226_v62, %v227_v1  ;;  %v1111_v1 = vld [vmem:[%s2005_s7 + $0x20] sm:$0xff] }
0x126f   :  { %v229_v57 = vsub.f32 %v214_v47, %v228_v2  ;;  %v230_v4 = vsub.f32 %v215_v0, %v228_v2  ;;  %v231_v37 = vsub.f32 %v216_v59, %v228_v2  ;;  %v232_v3 = vsub.f32 %v217_v34, %v228_v2 }
0x1270   :  { %v233_v51 = vsub.f32 %v218_v55, %v228_v2  ;;  %v234_v43 = vsub.f32 %v219_v48, %v228_v2  ;;  %v235_v46 = vsub.f32 %v220_v36, %v228_v2  ;;  %v236_v10 = vsub.f32 %v221_v31, %v228_v2 }
0x1271   :  { %v237_v6 = vmul.f32 1.442695, %v229_v57  ;;  %v239_v8 = vmul.f32 1.442695, %v230_v4  ;;  %v241_v52 = vmul.f32 1.442695, %v231_v37 }
0x1272   :  { %v243_v41 = vmul.f32 1.442695, %v232_v3  ;;  %v245_v53 = vmul.f32 1.442695, %v233_v51  ;;  %v247_v12 = vmul.f32 1.442695, %v234_v43 }
0x1273   :  { %1390 = vpow2.f32 %v237_v6  ;;  %v249_v44 = vmul.f32 1.442695, %v235_v46  ;;  %v251_v33 = vmul.f32 1.442695, %v236_v10 }
0x1274   :  { %1392 = vpow2.f32 %v239_v8 }
0x1275   :  { %1394 = vpow2.f32 %v241_v52 }
0x1276   :  { %1396 = vpow2.f32 %v243_v41 }
0x1277   :  { %1398 = vpow2.f32 %v245_v53 }
0x1278   :  { %1400 = vpow2.f32 %v247_v12 }
0x1279   :  { %1402 = vpow2.f32 %v249_v44 }
0x127a   :  { %1404 = vpow2.f32 %v251_v33 }
0x127d   :  { %v1391_v40 = vpop.eup %1390 }
0x127e   :  { %v1393_v56 = vpop.eup %1392 }
0x127f   :  { %v253_v9 = vadd.f32 %v1393_v56, %v1391_v40  ;;  %v1395_v14 = vpop.eup %1394 }
0x1280   :  { %v1397_v17 = vpop.eup %1396 }
0x1281   :  { %v254_v16 = vadd.f32 %v1395_v14, %v253_v9  ;;  %v1399_v63 = vpop.eup %1398 }
0x1282   :  { %v1401_v5 = vpop.eup %1400 }
0x1283   :  { %v255_v18 = vadd.f32 %v1397_v17, %v254_v16  ;;  %v1403_v49 = vpop.eup %1402 }
0x1284   :  { %v1405_v22 = vpop.eup %1404 }
0x1285   :  { %v256_v21 = vadd.f32 %v1399_v63, %v255_v18 }
0x1287   :  { %v257_v7 = vadd.f32 %v1401_v5, %v256_v21  ;;  %v1230_v21 = vld [vmem:[%s2007_s8] ss:$0 sm:$0xff] }
0x1289   :  { %v258_v50 = vadd.f32 %v1403_v49, %v257_v7 }
0x128b   :  { %v259_v23 = vadd.f32 %v1405_v22, %v258_v50 }
0x128d   :  { %1406 = vrcp.f32 %v259_v23 }
0x1297   :  { %v1407_v25 = vpop.eup %1406 }
0x1298   :  { %v1924_v28 = vmul.f32 %v1407_v25, %v1391_v40  ;;  %v262_v26 = vmul.f32 %v1407_v25, %v1393_v56  ;;  %v263_v27 = vmul.f32 %v1407_v25, %v1395_v14  ;;  %v264_v54 = vmul.f32 %v1407_v25, %v1397_v17 }
0x1299   :  { %v1093_v55 = vpop.permute.xlu0 %1092  ;;  %v265_v47 = vmul.f32 %v1407_v25, %v1399_v63  ;;  %v266_v48 = vmul.f32 %v1407_v25, %v1401_v5  ;;  %v267_v31 = vmul.f32 %v1407_v25, %v1403_v49  ;;  %v268_v30 = vmul.f32 %v1407_v25, %v1405_v22 }
0x129a   :  { %v1095_v58 = vadd.f32 %v1093_v55, %v1085_v38  ;;  %269 = vst.msk [vmem:[%s2006_s10] sm:$0xff] %vm67_vm0, %v1924_v28  ;;  %270 = vst.msk [vmem:[%s2006_s10 + $0x8] sm:$0xff] %vm67_vm0, %v262_v26  ;;  %v563_v32 = vmul.f32 %v1734_v19, %v1924_v28  ;;  %v640_v20 = vmul.f32 %v1773_v15, %v262_v26  ;;  %v1077_v40 = vmul.f32 0.5, %v1894_v45 }
0x129b   :  { %271 = vst.msk [vmem:[%s2006_s10 + $0x10] sm:$0xff] %vm67_vm0, %v263_v27  ;;  %272 = vst.msk [vmem:[%s2006_s10 + $0x18] sm:$0xff] %vm67_vm0, %v264_v54  ;;  %v565_v0 = vmul.f32 %v1734_v19, %v268_v30  ;;  %v642_v34 = vmul.f32 %v1773_v15, %v267_v31  ;;  %v717_v36 = vmul.f32 %v1792_v11, %v263_v27  ;;  %v1112_v19 = vld [vmem:[%s2005_s7 + $0x28] sm:$0xff]  ;;  %v1113_v15 = vld [vmem:[%s2005_s7 + $0x30] sm:$0xff] }
0x129c   :  { %273 = vst.msk [vmem:[%s2006_s10 + $0x20] sm:$0xff] %vm67_vm0, %v265_v47  ;;  %274 = vst.msk [vmem:[%s2006_s10 + $0x28] sm:$0xff] %vm67_vm0, %v266_v48  ;;  %1408 = vtanh.f32 %v1095_v58  ;;  %v641_v59 = vadd.f32 %v640_v20, %v563_v32  ;;  %v719_v35 = vmul.f32 %v1792_v11, %v266_v48  ;;  %v794_v62 = vmul.f32 %v1813_v42, %v264_v54  ;;  %v1114_v11 = vld [vmem:[%s2005_s7 + $0x38] sm:$0xff] }
0x129d   :  { %275 = vst.msk [vmem:[%s2006_s10 + $0x30] sm:$0xff] %vm67_vm0, %v267_v31  ;;  %276 = vst.msk [vmem:[%s2006_s10 + $0x38] sm:$0xff] %vm67_vm0, %v268_v30  ;;  %v643_v60 = vadd.f32 %v642_v34, %v565_v0  ;;  %v796_v57 = vmul.f32 %v1813_v42, %v265_v47  ;;  %v1305_v4 = vpack.c.bf16 %v1112_v19, %v1111_v1  ;;  %1410 = vtanh.f32 %v1077_v40 }
0x129e   :  { %v718_v61 = vadd.f32 %v717_v36, %v641_v59  ;;  %v871_v3 = vmul.f32 %v1834_v29, %v265_v47  ;;  %v873_v8 = vmul.f32 %v1834_v29, %v264_v54  ;;  %v1308_v51 = vpack.c.bf16 %v1114_v11, %v1113_v15 }
0x129f   :  { %v720_v2 = vadd.f32 %v719_v35, %v643_v60  ;;  %1306 = vmatpush3.bf16.msra.mxu1 %v1305_v4  ;;  %v948_v43 = vmul.f32 %v1854_v13, %v266_v48  ;;  %v950_v42 = vmul.f32 %v1854_v13, %v263_v27  ;;  %v1025_v53 = vmul.f32 %v1885_v39, %v267_v31 }
0x12a0   :  { %v795_v37 = vadd.f32 %v794_v62, %v718_v61  ;;  %1307 = vmatprep.subr.bf16.mxu1 %v1413_v24  ;;  %v1027_v12 = vmul.f32 %v1885_v39, %v262_v26 }
0x12a1   :  { %v797_v6 = vadd.f32 %v796_v57, %v720_v2 }
0x12a2   :  { %v872_v52 = vadd.f32 %v871_v3, %v795_v37 }
0x12a3   :  { %v874_v41 = vadd.f32 %v873_v8, %v797_v6  ;;  %1309 = vmatpush3.bf16.msra.mxu1 %v1308_v51 }
0x12a4   :  { %v949_v46 = vadd.f32 %v948_v43, %v872_v52 }
0x12a5   :  { %v951_v10 = vadd.f32 %v950_v42, %v874_v41 }
0x12a6   :  { %v1409_v44 = vpop.eup %1408  ;;  %v1026_v33 = vadd.f32 %v1025_v53, %v949_v46 }
0x12a7   :  { %1098 = vrot.lane.b32.xlu1 %v1409_v44, %s1416_s5  ;;  %v1028_v29 = vadd.f32 %v1027_v12, %v951_v10  ;;  %v1411_v56 = vpop.eup %1410 }
0x12a8   :  { %v1081_v24 = vmul.f32 0.5, %v1411_v56 }
0x12aa   :  { %v1083_v9 = vadd.f32 0.5, %v1081_v24 }
0x1319   :  { %v1099_v14 = vpop.permute.xlu1 %1098 }
0x131a   :  { %v1101_v13 = vmul.f32 %v1099_v14, %v1083_v9 }
0x131c   :  { %v1102_v16 = vmul.f32 %v1101_v13, %v268_v30  ;;  %v1104_v17 = vmul.f32 %v1101_v13, %v1924_v28 }
0x131e   :  { %v1103_v18 = vadd.f32 %v1102_v16, %v1026_v33  ;;  %v1105_v63 = vadd.f32 %v1104_v17, %v1028_v29 }
0x1320   :  { %v1106_v39 = vsel %vm51_vm3, %v1103_v18, %v1105_v63 }
0x1321   :  { %1274 = vmatmul.mubr.msk.f32.vlgmr.msra.gmra.mrb[28].mxu1 %vm305_vm2, %v1106_v39 }
0x13f4   :  { %v1191_v45 = vpop.f32.mrb[28].mxu1 }
0x13f5   :  { %v1192_v5 = vadd.f32 %v1230_v21, %v1191_v45  ;;  %v1275_v7 = vpop.f32.mrb[29].mxu1 }
0x13f7   :  { %1196 = vst.msk [vmem:[%s2008_s9] sm:$0xff] %vm1195_vm12, %v1192_v5 }

</bundles_post_ra>
